<compile_context>
chip_gen: v7x
topology: tpu7x:2x2x1
jax: 0.10.0
libtpu: 0.0.40
codegen_flags: <defaults>
</compile_context>

<pallas_src>
import functools
import math

import jax
import jax.numpy as jnp
from jax.experimental import pallas as pl
from jax.experimental.pallas import tpu as pltpu


# ----------------------------------------------------------------------------
# Fused self-attention kernel (one grid step == one batch element)
# ----------------------------------------------------------------------------
def _self_attn_kernel(x_ref, wq_ref, wk_ref, wv_ref, bq_ref, bk_ref, bv_ref,
                      o_ref):
    # x_ref: [N, Cp] f32 ; w*: bf16 ; b*: [1, Cout_p] f32 ; o_ref: [N, Cp] f32
    x = x_ref[...]                               # f32, used for exact residual
    xb = x.astype(jnp.bfloat16)                  # bf16 MXU feed

    q = jnp.dot(xb, wq_ref[...], preferred_element_type=jnp.float32) + bq_ref[...]
    k = jnp.dot(xb, wk_ref[...], preferred_element_type=jnp.float32) + bk_ref[...]
    v = jnp.dot(xb, wv_ref[...], preferred_element_type=jnp.float32) + bv_ref[...]

    # energy[i, j] = <q_i, k_j>  (contract the channel dim of both operands)
    energy = jax.lax.dot_general(
        q.astype(jnp.bfloat16), k.astype(jnp.bfloat16),
        (((1,), (1,)), ((), ())),
        preferred_element_type=jnp.float32)                       # [N, N] f32

    # softmax over keys (axis=-1), numerically stable
    m = jnp.max(energy, axis=-1, keepdims=True)
    p = jnp.exp(energy - m)
    attn = p * pl.reciprocal(jnp.sum(p, axis=-1, keepdims=True), approx=True)

    # out[i, c] = sum_j attn[i, j] * v[j, c]   (gamma already folded into v)
    out = jnp.dot(attn.astype(jnp.bfloat16), v.astype(jnp.bfloat16),
                  preferred_element_type=jnp.float32)             # [N, Cp]

    o_ref[...] = (out + x).astype(o_ref.dtype)


def _round_up(n, m):
    return ((n + m - 1) // m) * m


# ----------------------------------------------------------------------------
# Wrapper: NCHW in / NCHW out, channel padding to 128 lanes, gamma folding
# ----------------------------------------------------------------------------
def self_attn_pallas(x_nchw, params):
    """x_nchw: [B, C, W, H] float32 -> [B, C, W, H] float32."""
    B, C, W, H = x_nchw.shape
    N = W * H
    Cq = params["wq"].shape[0]

    Cp = _round_up(max(C, 128), 128)      # lane-dense value / output channels
    Cqp = _round_up(max(Cq, 128), 128)    # lane-dense query / key channels

    # NCHW -> [B, N, C] with n = w*H + h (matches torch .view(B, C, W*H))
    x_flat = jnp.transpose(x_nchw, (0, 2, 3, 1)).reshape(B, N, C)
    x_flat = jnp.pad(x_flat, ((0, 0), (0, 0), (0, Cp - C))).astype(jnp.float32)

    def to_mat(w, cout_p):
        # PyTorch 1x1 conv weight [Cout, Cin, 1, 1] -> [Cp, cout_p] bf16
        m = jnp.transpose(w.reshape(w.shape[0], w.shape[1]), (1, 0))
        m = jnp.pad(m, ((0, Cp - m.shape[0]), (0, cout_p - m.shape[1])))
        return m.astype(jnp.bfloat16)

    def to_bias(b, cout_p):
        return jnp.pad(b, (0, cout_p - b.shape[0])).reshape(
            1, cout_p).astype(jnp.float32)

    gamma = jnp.asarray(params["gamma"], jnp.float32).reshape(())
    wq_m = to_mat(params["wq"], Cqp)
    wk_m = to_mat(params["wk"], Cqp)
    wv_m = to_mat(params["wv"].astype(jnp.float32) * gamma, Cp)   # fold gamma
    bq_v = to_bias(params["bq"], Cqp)
    bk_v = to_bias(params["bk"], Cqp)
    bv_v = to_bias(params["bv"].astype(jnp.float32) * gamma, Cp)  # fold gamma

    out = pl.pallas_call(
        _self_attn_kernel,
        grid=(B,),
        in_specs=[
            pl.BlockSpec((None, N, Cp), lambda b: (b, 0, 0)),   # x (squeezed B)
            pl.BlockSpec((Cp, Cqp), lambda b: (0, 0)),          # Wq
            pl.BlockSpec((Cp, Cqp), lambda b: (0, 0)),          # Wk
            pl.BlockSpec((Cp, Cp), lambda b: (0, 0)),           # gamma*Wv
            pl.BlockSpec((1, Cqp), lambda b: (0, 0)),           # bq
            pl.BlockSpec((1, Cqp), lambda b: (0, 0)),           # bk
            pl.BlockSpec((1, Cp), lambda b: (0, 0)),            # gamma*bv
        ],
        out_specs=pl.BlockSpec((None, N, Cp), lambda b: (b, 0, 0)),
        out_shape=jax.ShapeDtypeStruct((B, N, Cp), jnp.float32),
        compiler_params=pltpu.CompilerParams(
            dimension_semantics=("parallel",)),
    )(x_flat, wq_m, wk_m, wv_m, bq_v, bk_v, bv_v)

    out = out[:, :, :C].reshape(B, W, H, C)
    return jnp.transpose(out, (0, 3, 1, 2))


# ----------------------------------------------------------------------------
# Pure-JAX f32 reference (mirrors the PyTorch forward exactly)
# ----------------------------------------------------------------------------
def self_attn_ref(x_nchw, params):
    B, C, W, H = x_nchw.shape
    N = W * H
    x = x_nchw.reshape(B, C, N).astype(jnp.float32)
    wq = params["wq"].reshape(-1, C)
    wk = params["wk"].reshape(-1, C)
    wv = params["wv"].reshape(-1, C)
    q = jnp.einsum("oc,bcn->bon", wq, x) + params["bq"][None, :, None]
    k = jnp.einsum("oc,bcn->bon", wk, x) + params["bk"][None, :, None]
    v = jnp.einsum("oc,bcn->bon", wv, x) + params["bv"][None, :, None]
    energy = jnp.einsum("bci,bcj->bij", q, k)          # [B, N, N]
    attn = jax.nn.softmax(energy, axis=-1)
    out = jnp.einsum("bcj,bij->bci", v, attn)          # [B, C, N]
    out = out.reshape(B, C, W, H)
    return jnp.asarray(params["gamma"], jnp.float32).reshape(()) * out + x_nchw


# ----------------------------------------------------------------------------
if __name__ == "__main__":
    B, C, W, H = 2, 32, 16, 16          # in_dim=32 -> query/key channels = 4
    Cq = C // 8

    key = jax.random.PRNGKey(0)
    kx, kq, kk, kv, kbq, kbk, kbv = jax.random.split(key, 7)

    bound = 1.0 / math.sqrt(C)          # PyTorch Conv2d default init range
    params = dict(
        wq=jax.random.uniform(kq, (Cq, C, 1, 1), jnp.float32, -bound, bound),
        bq=jax.random.uniform(kbq, (Cq,), jnp.float32, -bound, bound),
        wk=jax.random.uniform(kk, (Cq, C, 1, 1), jnp.float32, -bound, bound),
        bk=jax.random.uniform(kbk, (Cq,), jnp.float32, -bound, bound),
        wv=jax.random.uniform(kv, (C, C, 1, 1), jnp.float32, -bound, bound),
        bv=jax.random.uniform(kbv, (C,), jnp.float32, -bound, bound),
        # nn.Parameter(torch.zeros(1)) in the module; a nonzero value is used
        # here so the attention path is actually exercised by the test.
        gamma=jnp.asarray([0.8], jnp.float32),
    )
    x = jax.random.normal(kx, (B, C, W, H), jnp.float32)

    fwd = jax.jit(functools.partial(self_attn_pallas, params=params))
    out = jax.block_until_ready(fwd(x))

    ref = self_attn_ref(x, params)
    assert out.shape == (B, C, W, H), out.shape
    assert bool(jnp.all(jnp.isfinite(out)))
    max_err = float(jnp.max(jnp.abs(out - ref)))
    assert max_err < 5e-2, f"max abs error vs f32 reference: {max_err}"
    print("KERNEL_OK")
</pallas_src>

<mosaic_0001>
module attributes {stable_mosaic.version = 11 : i64} {
  func.func @_self_attn_kernel(%arg0: i32, %arg1: memref<1x256x128xf32, #tpu.memory_space<vmem>>, %arg2: memref<128x128xbf16, #tpu.memory_space<vmem>>, %arg3: memref<128x128xbf16, #tpu.memory_space<vmem>>, %arg4: memref<128x128xbf16, #tpu.memory_space<vmem>>, %arg5: memref<1x128xf32, #tpu.memory_space<vmem>>, %arg6: memref<1x128xf32, #tpu.memory_space<vmem>>, %arg7: memref<1x128xf32, #tpu.memory_space<vmem>>, %arg8: memref<1x256x128xf32, #tpu.memory_space<vmem>>) attributes {dimension_semantics = [#tpu.dimension_semantics<parallel>], iteration_bounds = array<i64: 2>, scalar_prefetch = 0 : i64, scratch_operands = 0 : i64, tpu.core_type = #tpu.core_type<tc>, window_params = [{transform_indices = @transform_0, window_bounds = array<i64: 1, 256, 128>}, {pipeline_mode = #tpu.pipeline_mode<synchronous>, transform_indices = @transform_1, window_bounds = array<i64: 128, 128>}, {pipeline_mode = #tpu.pipeline_mode<synchronous>, transform_indices = @transform_2, window_bounds = array<i64: 128, 128>}, {pipeline_mode = #tpu.pipeline_mode<synchronous>, transform_indices = @transform_3, window_bounds = array<i64: 128, 128>}, {pipeline_mode = #tpu.pipeline_mode<synchronous>, transform_indices = @transform_4, window_bounds = array<i64: 1, 128>}, {pipeline_mode = #tpu.pipeline_mode<synchronous>, transform_indices = @transform_5, window_bounds = array<i64: 1, 128>}, {pipeline_mode = #tpu.pipeline_mode<synchronous>, transform_indices = @transform_6, window_bounds = array<i64: 1, 128>}, {transform_indices = @transform_7, window_bounds = array<i64: 1, 256, 128>}]} {
    %c0 = arith.constant 0 : index
    %c0_0 = arith.constant 0 : index
    %c0_1 = arith.constant 0 : index
    %0 = vector.load %arg1[%c0, %c0_0, %c0_1] : memref<1x256x128xf32, #tpu.memory_space<vmem>>, vector<1x256x128xf32>
    %1 = vector.shape_cast %0 : vector<1x256x128xf32> to vector<256x128xf32>
    %2 = arith.truncf %1 : vector<256x128xf32> to vector<256x128xbf16>
    %c0_2 = arith.constant 0 : index
    %c0_3 = arith.constant 0 : index
    %3 = vector.load %arg2[%c0_2, %c0_3] : memref<128x128xbf16, #tpu.memory_space<vmem>>, vector<128x128xbf16>
    %cst = arith.constant dense<0.000000e+00> : vector<256x128xf32>
    %4 = tpu.matmul %2, %3, %cst {dimension_numbers = #tpu.dot_dimension_numbers<[1], [0], [0], [1], [0, 0, 1, 1], [], []>} : vector<256x128xbf16>, vector<128x128xbf16>, vector<256x128xf32> -> vector<256x128xf32>
    %c0_4 = arith.constant 0 : index
    %c0_5 = arith.constant 0 : index
    %5 = vector.load %arg5[%c0_4, %c0_5] : memref<1x128xf32, #tpu.memory_space<vmem>>, vector<1x128xf32>
    %6 = vector.broadcast %5 : vector<1x128xf32> to vector<256x128xf32>
    %7 = arith.addf %4, %6 : vector<256x128xf32>
    %c0_6 = arith.constant 0 : index
    %c0_7 = arith.constant 0 : index
    %8 = vector.load %arg3[%c0_6, %c0_7] : memref<128x128xbf16, #tpu.memory_space<vmem>>, vector<128x128xbf16>
    %cst_8 = arith.constant dense<0.000000e+00> : vector<256x128xf32>
    %9 = tpu.matmul %2, %8, %cst_8 {dimension_numbers = #tpu.dot_dimension_numbers<[1], [0], [0], [1], [0, 0, 1, 1], [], []>} : vector<256x128xbf16>, vector<128x128xbf16>, vector<256x128xf32> -> vector<256x128xf32>
    %c0_9 = arith.constant 0 : index
    %c0_10 = arith.constant 0 : index
    %10 = vector.load %arg6[%c0_9, %c0_10] : memref<1x128xf32, #tpu.memory_space<vmem>>, vector<1x128xf32>
    %11 = vector.broadcast %10 : vector<1x128xf32> to vector<256x128xf32>
    %12 = arith.addf %9, %11 : vector<256x128xf32>
    %c0_11 = arith.constant 0 : index
    %c0_12 = arith.constant 0 : index
    %13 = vector.load %arg4[%c0_11, %c0_12] : memref<128x128xbf16, #tpu.memory_space<vmem>>, vector<128x128xbf16>
    %cst_13 = arith.constant dense<0.000000e+00> : vector<256x128xf32>
    %14 = tpu.matmul %2, %13, %cst_13 {dimension_numbers = #tpu.dot_dimension_numbers<[1], [0], [0], [1], [0, 0, 1, 1], [], []>} : vector<256x128xbf16>, vector<128x128xbf16>, vector<256x128xf32> -> vector<256x128xf32>
    %c0_14 = arith.constant 0 : index
    %c0_15 = arith.constant 0 : index
    %15 = vector.load %arg7[%c0_14, %c0_15] : memref<1x128xf32, #tpu.memory_space<vmem>>, vector<1x128xf32>
    %16 = vector.broadcast %15 : vector<1x128xf32> to vector<256x128xf32>
    %17 = arith.addf %14, %16 : vector<256x128xf32>
    %18 = arith.truncf %7 : vector<256x128xf32> to vector<256x128xbf16>
    %19 = arith.truncf %12 : vector<256x128xf32> to vector<256x128xbf16>
    %cst_16 = arith.constant dense<0.000000e+00> : vector<256x256xf32>
    %20 = tpu.matmul %18, %19, %cst_16 {dimension_numbers = #tpu.dot_dimension_numbers<[1], [1], [0], [0], [0, 0, 1, 0], [], []>} : vector<256x128xbf16>, vector<256x128xbf16>, vector<256x256xf32> -> vector<256x256xf32>
    %cst_17 = arith.constant dense<0xFF800000> : vector<256xf32>
    %21 = vector.multi_reduction <maximumf>, %20, %cst_17 [1] : vector<256x256xf32> to vector<256xf32>
    %22 = vector.shape_cast %21 : vector<256xf32> to vector<256x1xf32>
    %23 = vector.broadcast %22 : vector<256x1xf32> to vector<256x256xf32>
    %24 = arith.subf %20, %23 : vector<256x256xf32>
    %25 = math.exp %24 : vector<256x256xf32>
    %cst_18 = arith.constant dense<0.000000e+00> : vector<256xf32>
    %26 = vector.multi_reduction <add>, %25, %cst_18 [1] : vector<256x256xf32> to vector<256xf32>
    %27 = vector.shape_cast %26 : vector<256xf32> to vector<256x1xf32>
    %28 = tpu.reciprocal %27 {approx = true} : vector<256x1xf32> -> vector<256x1xf32>
    %29 = vector.broadcast %28 : vector<256x1xf32> to vector<256x256xf32>
    %30 = arith.mulf %25, %29 : vector<256x256xf32>
    %31 = arith.truncf %30 : vector<256x256xf32> to vector<256x256xbf16>
    %32 = arith.truncf %17 : vector<256x128xf32> to vector<256x128xbf16>
    %cst_19 = arith.constant dense<0.000000e+00> : vector<256x128xf32>
    %33 = tpu.matmul %31, %32, %cst_19 {dimension_numbers = #tpu.dot_dimension_numbers<[1], [0], [0], [1], [0, 0, 1, 1], [], []>} : vector<256x256xbf16>, vector<256x128xbf16>, vector<256x128xf32> -> vector<256x128xf32>
    %34 = arith.addf %33, %1 : vector<256x128xf32>
    %c0_20 = arith.constant 0 : index
    %c0_21 = arith.constant 0 : index
    %c0_22 = arith.constant 0 : index
    %35 = vector.load %arg8[%c0_20, %c0_21, %c0_22] : memref<1x256x128xf32, #tpu.memory_space<vmem>>, vector<1x256x128xf32>
    %36 = vector.shape_cast %35 : vector<1x256x128xf32> to vector<256x128xf32>
    %37 = vector.shape_cast %34 : vector<256x128xf32> to vector<1x256x128xf32>
    tpu.vector_store %arg8[%c0_20, %c0_21, %c0_22], %37 {strides = array<i32>} : memref<1x256x128xf32, #tpu.memory_space<vmem>>, vector<1x256x128xf32>,
    return
  }
  func.func @transform_0(%arg0: i32) -> (i32, i32, i32) {
    %c0_i32 = arith.constant 0 : i32
    %c0_i32_0 = arith.constant 0 : i32
    %c0_i32_1 = arith.constant 0 : i32
    return %arg0, %c0_i32, %c0_i32_0 : i32, i32, i32
  }
  func.func @transform_1(%arg0: i32) -> (i32, i32) {
    %c0_i32 = arith.constant 0 : i32
    %c0_i32_0 = arith.constant 0 : i32
    %c0_i32_1 = arith.constant 0 : i32
    return %c0_i32, %c0_i32_0 : i32, i32
  }
  func.func @transform_2(%arg0: i32) -> (i32, i32) {
    %c0_i32 = arith.constant 0 : i32
    %c0_i32_0 = arith.constant 0 : i32
    %c0_i32_1 = arith.constant 0 : i32
    return %c0_i32, %c0_i32_0 : i32, i32
  }
  func.func @transform_3(%arg0: i32) -> (i32, i32) {
    %c0_i32 = arith.constant 0 : i32
    %c0_i32_0 = arith.constant 0 : i32
    %c0_i32_1 = arith.constant 0 : i32
    return %c0_i32, %c0_i32_0 : i32, i32
  }
  func.func @transform_4(%arg0: i32) -> (i32, i32) {
    %c0_i32 = arith.constant 0 : i32
    %c0_i32_0 = arith.constant 0 : i32
    %c0_i32_1 = arith.constant 0 : i32
    return %c0_i32, %c0_i32_0 : i32, i32
  }
  func.func @transform_5(%arg0: i32) -> (i32, i32) {
    %c0_i32 = arith.constant 0 : i32
    %c0_i32_0 = arith.constant 0 : i32
    %c0_i32_1 = arith.constant 0 : i32
    return %c0_i32, %c0_i32_0 : i32, i32
  }
  func.func @transform_6(%arg0: i32) -> (i32, i32) {
    %c0_i32 = arith.constant 0 : i32
    %c0_i32_0 = arith.constant 0 : i32
    %c0_i32_1 = arith.constant 0 : i32
    return %c0_i32, %c0_i32_0 : i32, i32
  }
  func.func @transform_7(%arg0: i32) -> (i32, i32, i32) {
    %c0_i32 = arith.constant 0 : i32
    %c0_i32_0 = arith.constant 0 : i32
    %c0_i32_1 = arith.constant 0 : i32
    return %arg0, %c0_i32, %c0_i32_0 : i32, i32, i32
  }
}

</mosaic_0001>

<bundles_post_ra>
// kernel: self_attn_pallas.1
= control target key start
LH: loop header
LB: loop body
LE: loop exit
PB: predicated region body
PF: predicated region fallthrough
CT: control target
= control target key end

     0   :  { %12 = vsyncpa [#allocation3], 0  ;;  %s4052_s0 = inlined_call_operand.vmem [shape: f32[2,256,128], index: 0, kind: input, shape index: {}]   ;;  %s4053_s1 = inlined_call_operand.vmem [shape: bf16[128,128], index: 1, kind: input, shape index: {}]   ;;  %s4054_s2 = inlined_call_operand.vmem [shape: bf16[128,128], index: 2, kind: input, shape index: {}]   ;;  %s4055_s3 = inlined_call_operand.vmem [shape: bf16[128,128], index: 3, kind: input, shape index: {}]   ;;  %s4056_s4 = inlined_call_operand.vmem [shape: f32[1,128], index: 4, kind: input, shape index: {}]   ;;  %s4057_s5 = inlined_call_operand.vmem [shape: f32[1,128], index: 5, kind: input, shape index: {}]   ;;  %s4058_s6 = inlined_call_operand.vmem [shape: f32[1,128], index: 6, kind: input, shape index: {}]   ;;  %s4059_s7 = inlined_call_operand.hbm [shape: f32[2,256,128], index: 7, kind: output, shape index: {}]  }
   0x1   :  { %14 = vsyncpa [#allocation3 + $0x1], 0  ;;  %s2873_s24 = smov 0   ;;  %s2875_s25 = smov 0  }
   0x2   :  { %s2877_s26 = smov 0   ;;  %s2879_s27 = smov 0  }
   0x3 LB: > { %s2894_s28 = sadd.s32 4294967295, %s2828_s27   ;;  %s2044_s29 = sadd.s32 4294967294, %s2828_s27   ;;  %s2828_s27 = sphi %s2879_s27, %s4214_s27   ;;  %s2824_s26 = sphi %s2877_s26, %s4213_s26   ;;  %s2820_s25 = sphi %s2875_s25, %s4212_s25   ;;  %s2816_s24 = sphi %s2873_s24, %s4211_s24  }
   0x4   : > { %s2898_s30 = sadd.s32 1, %s2828_s27   ;;  %s179_s8 = sadd.s32 1, %s2824_s26 }
   0x5   : > { %s176_s9 = ssub.s32 %s2828_s27, %s2898_s30  ;;  %p189_p0 = scmp.ne.s32.totalorder %s2824_s26, %s2820_s25 }
   0x6   : > { %p177_p1 = scmp.eq.s32.totalorder %s176_s9, 0  ;;  %p190_p2 = scmp.eq.s32.totalorder %s2894_s28, 1 }
   0x7   : > { %p195_p3 = scmp.ne.s32.totalorder %s2820_s25, %s2816_s24  ;;  %p196_p4 = scmp.eq.s32.totalorder %s2044_s29, 1 }
   0x8   : > { %s2909_s10 = scalar_select %p177_p1, %s2824_s26, %s179_s8  }
   0x9   : > { %p2911_p5 = por %p190_p2, %p189_p0  ;;  %p2915_p6 = por %p196_p4, %p195_p3 }
   0xa   : > { %p2047_p7 = scmp.ge.s32.totalorder %s2828_s27, 1  ;;  %p240_p8 = scmp.lt.s32.totalorder %s2828_s27, 3 }
   0xc   : > { %p241_p9 = pnand %p2047_p7, %p240_p8 }
   0xe   : > { %244 = sbr.rel (%p241_p9) target bundleno = 1361 (0x551), region = 48 }
  0x15   : > { %v2518_v0 = vld [vmem:[%s4053_s1] sm:$0xff]   ;;  %p272_p10 = scmp.lt.s32.totalorder %s2894_s28, 1  ;;  %v2519_v1 = vld [vmem:[%s4053_s1 + $0x8] sm:$0xff]   ;;  %v2520_v2 = vld [vmem:[%s4053_s1 + $0x10] sm:$0xff]   ;;  %s269_s19 = sand.u32 1, %s2820_s25  }
  0x16   : > { %2461 = vmatprep.subr.bf16.mxu1 %v2518_v0  ;;  %2317 = vmatprep.subr.bf16.mxu0 %v2518_v0  ;;  %v2521_v3 = vld [vmem:[%s4053_s1 + $0x18] sm:$0xff]   ;;  %v2522_v7 = vld [vmem:[%s4053_s1 + $0x20] sm:$0xff]   ;;  %v2523_v8 = vld [vmem:[%s4053_s1 + $0x28] sm:$0xff]   ;;  %s2084_s22 = sshll.u32 %s2894_s28, 12  ;;  %s2830_s15 = smov [#allocation2]  }
  0x17   : > { %s273_s17 = scalar_select %p272_p10, %s2894_s28, 1  ;;  %2469 = vmatpush3.bf16.msra.mxu1 %v2518_v0  ;;  %2318 = vmatpush3.bf16.msra.mxu0 %v2518_v0  ;;  %v2524_v9 = vld [vmem:[%s4053_s1 + $0x30] sm:$0xff]   ;;  %v2525_v13 = vld [vmem:[%s4053_s1 + $0x38] sm:$0xff]   ;;  %v2526_v16 = vld [vmem:[%s4054_s2] sm:$0xff]  }
  0x18   : > { %2462 = vmatprep.subr.bf16.mxu1 %v2519_v1  ;;  %2319 = vmatprep.subr.bf16.mxu0 %v2519_v1  ;;  %v2527_v22 = vld [vmem:[%s4054_s2 + $0x8] sm:$0xff]   ;;  %v2528_v30 = vld [vmem:[%s4054_s2 + $0x10] sm:$0xff]   ;;  %v2529_v37 = vld [vmem:[%s4054_s2 + $0x18] sm:$0xff]   ;;  %s4002_s13 = scalar_lea.hbm %s4059_s7, %s2084_s22  ;;  %s4011_s28 = scalar_lea.sflag [#allocation3], %s269_s19 }
  0x19   : > { %s2083_s20 = sshll.u32 %s273_s17, 8  ;;  %v2530_v44 = vld [vmem:[%s4054_s2 + $0x20] sm:$0xff]   ;;  %v2531_v51 = vld [vmem:[%s4054_s2 + $0x28] sm:$0xff]   ;;  %v2532_v58 = vld [vmem:[%s4054_s2 + $0x30] sm:$0xff]   ;;  %s2770_s16 = sshll.u32 %s2830_s15, 4  ;;  %s2771_s16 = int_to_ptr.vmem [resolvable:$false] %s2770_s16 }
  0x1a   : > { %s2935_s23 = scalar_lea.vmem %s4052_s0, %s2083_s20  ;;  %v2533_v62 = vld [vmem:[%s4054_s2 + $0x38] sm:$0xff]   ;;  %v3076_v0 = vld [vmem:[%s4056_s4] ss:$0 sm:$0xff]  ;;  %s2048_s20 = sshll.u32 %s269_s19, 8 }
  0x1b   : > { %2470 = vmatpush3.bf16.msra.mxu1 %v2519_v1  ;;  %2320 = vmatpush3.bf16.msra.mxu0 %v2519_v1  ;;  %v294_v4 = vld [vmem:[%s2935_s23 + $0x80] sm:$0xff]  ;;  %v295_v5 = vld [vmem:[%s2935_s23 + $0x88] sm:$0xff]  ;;  %v296_v14 = vld [vmem:[%s2935_s23 + $0x90] sm:$0xff]  ;;  %s3935_s21 = scalar_lea.vmem [#allocation2], %s2048_s20  ;;  %s2772_s17 = scalar_lea.vmem %s2771_s16, 8192 }
  0x1c   : > { %2463 = vmatprep.subr.bf16.mxu1 %v2520_v2  ;;  %2321 = vmatprep.subr.bf16.mxu0 %v2520_v2  ;;  %v2942_v6 = vpack.c.bf16 %v295_v5, %v294_v4  ;;  %v278_v10 = vld [vmem:[%s2935_s23] sm:$0xff]  ;;  %v279_v11 = vld [vmem:[%s2935_s23 + $0x8] sm:$0xff]  ;;  %v297_v15 = vld [vmem:[%s2935_s23 + $0x98] sm:$0xff]  ;;  %s1982_s29 = sshll.u32 %s3935_s21, 4  ;;  %s4004_s29 = int_to_ptr.vmem [resolvable:$true] %s1982_s29 }
  0x1d   : > { %v2956_v12 = vpack.c.bf16 %v279_v11, %v278_v10  ;;  %v298_v17 = vld [vmem:[%s2935_s23 + $0xa0] sm:$0xff]  ;;  %v299_v18 = vld [vmem:[%s2935_s23 + $0xa8] sm:$0xff]  ;;  %v280_v19 = vld [vmem:[%s2935_s23 + $0x10] sm:$0xff]  ;;  %v2971_v21 = vpack.c.bf16 %v297_v15, %v296_v14  ;;  %s2766_s14 = scalar_lea.vmem %s4004_s29, 4096  ;;  %p2773_p0 = scmp.lt.s32.totalorder %s4004_s29, %s2771_s16 }
  0x1e   : > { %2349 = vmatprep.mubr.bf16.mxu1 %v2942_v6  ;;  %v281_v20 = vld [vmem:[%s2935_s23 + $0x18] sm:$0xff]  ;;  %v2976_v23 = vpack.c.bf16 %v299_v18, %v298_v17  ;;  %v282_v24 = vld [vmem:[%s2935_s23 + $0x20] sm:$0xff]  ;;  %v283_v25 = vld [vmem:[%s2935_s23 + $0x28] sm:$0xff]  ;;  %p2767_p11 = scmp.ne.s32.totalorder %s4004_s29, %s2766_s14  ;;  %p2774_p1 = scmp.lt.s32.totalorder %s2772_s17, %s2766_s14 }
  0x1f   : > { %2471 = vmatpush3.bf16.msra.mxu1 %v2520_v2  ;;  %2322 = vmatpush3.bf16.msra.mxu0 %v2520_v2  ;;  %v2981_v26 = vpack.c.bf16 %v281_v20, %v280_v19  ;;  %v300_v27 = vld [vmem:[%s2935_s23 + $0xb0] sm:$0xff]  ;;  %v301_v28 = vld [vmem:[%s2935_s23 + $0xb8] sm:$0xff]  ;;  %v2986_v29 = vpack.c.bf16 %v283_v25, %v282_v24  ;;  %v302_v31 = vld [vmem:[%s2935_s23 + $0xc0] sm:$0xff] }
  0x20   : > { %2464 = vmatprep.subr.bf16.mxu1 %v2521_v3  ;;  %2323 = vmatprep.subr.bf16.mxu0 %v2521_v3  ;;  %v303_v32 = vld [vmem:[%s2935_s23 + $0xc8] sm:$0xff]  ;;  %v2995_v33 = vpack.c.bf16 %v301_v28, %v300_v27  ;;  %v284_v35 = vld [vmem:[%s2935_s23 + $0x30] sm:$0xff]  ;;  %v285_v36 = vld [vmem:[%s2935_s23 + $0x38] sm:$0xff]  ;;  %p2768_p12 = pnand %p2767_p11, %p2911_p5  ;;  %p2775_p2 = por %p2774_p1, %p2773_p0 }
  0x21   : > { %2333 = vmatprep.mubr.bf16.mxu0 %v2956_v12  ;;  %v2997_v34 = vpack.c.bf16 %v303_v32, %v302_v31  ;;  %v286_v38 = vld [vmem:[%s2935_s23 + $0x40] sm:$0xff]  ;;  %v287_v39 = vld [vmem:[%s2935_s23 + $0x48] sm:$0xff]  ;;  %v3007_v40 = vpack.c.bf16 %v285_v36, %v284_v35  ;;  %v304_v41 = vld [vmem:[%s2935_s23 + $0xd0] sm:$0xff] }
  0x22   : > { %v305_v42 = vld [vmem:[%s2935_s23 + $0xd8] sm:$0xff]  ;;  %v3012_v43 = vpack.c.bf16 %v287_v39, %v286_v38  ;;  %v306_v45 = vld [vmem:[%s2935_s23 + $0xe0] sm:$0xff]  ;;  %v307_v46 = vld [vmem:[%s2935_s23 + $0xe8] sm:$0xff]  ;;  %p2769_p13 = pneg %p2768_p12 }
  0x23   : > { %2472 = vmatpush3.bf16.msra.mxu1 %v2521_v3  ;;  %2324 = vmatpush3.bf16.msra.mxu0 %v2521_v3  ;;  %v3021_v47 = vpack.c.bf16 %v305_v42, %v304_v41  ;;  %v3023_v48 = vpack.c.bf16 %v307_v46, %v306_v45  ;;  %v288_v49 = vld [vmem:[%s2935_s23 + $0x50] sm:$0xff]  ;;  %v289_v50 = vld [vmem:[%s2935_s23 + $0x58] sm:$0xff]  ;;  %v290_v52 = vld [vmem:[%s2935_s23 + $0x60] sm:$0xff] }
  0x24   : > { %2465 = vmatprep.subr.bf16.mxu1 %v2522_v7  ;;  %2325 = vmatprep.subr.bf16.mxu0 %v2522_v7  ;;  %v291_v53 = vld [vmem:[%s2935_s23 + $0x68] sm:$0xff]  ;;  %v3033_v54 = vpack.c.bf16 %v289_v50, %v288_v49  ;;  %v308_v55 = vld [vmem:[%s2935_s23 + $0xf0] sm:$0xff]  ;;  %v309_v56 = vld [vmem:[%s2935_s23 + $0xf8] sm:$0xff]  ;;  %p2776_p3 = pnand %p2775_p2, %p2769_p13 }
  0x25   : > { %v3038_v57 = vpack.c.bf16 %v291_v53, %v290_v52  ;;  %v3045_v59 = vpack.c.bf16 %v309_v56, %v308_v55  ;;  %v292_v60 = vld [vmem:[%s2935_s23 + $0x70] sm:$0xff]  ;;  %v293_v61 = vld [vmem:[%s2935_s23 + $0x78] sm:$0xff] }
  0x26   : > { %v3053_v63 = vpack.c.bf16 %v293_v61, %v292_v60 }
  0x27   : > { %2473 = vmatpush3.bf16.msra.mxu1 %v2522_v7  ;;  %2326 = vmatpush3.bf16.msra.mxu0 %v2522_v7 }
  0x28   : > { %2466 = vmatprep.subr.bf16.mxu1 %v2523_v8  ;;  %2327 = vmatprep.subr.bf16.mxu0 %v2523_v8 }
  0x2b   : > { %2474 = vmatpush3.bf16.msra.mxu1 %v2523_v8  ;;  %2328 = vmatpush3.bf16.msra.mxu0 %v2523_v8 }
  0x2c   : > { %2467 = vmatprep.subr.bf16.mxu1 %v2524_v9  ;;  %2329 = vmatprep.subr.bf16.mxu0 %v2524_v9 }
  0x2f   : > { %2475 = vmatpush3.bf16.msra.mxu1 %v2524_v9  ;;  %2330 = vmatpush3.bf16.msra.mxu0 %v2524_v9 }
  0x30   : > { %2468 = vmatprep.subr.bf16.mxu1 %v2525_v13  ;;  %2331 = vmatprep.subr.bf16.mxu0 %v2525_v13 }
  0x33   : > { %2476 = vmatpush3.bf16.msra.mxu1 %v2525_v13  ;;  %2332 = vmatpush3.bf16.msra.mxu0 %v2525_v13 }
  0x34   : > { %2365 = vmatprep.subr.bf16.mxu1 %v2526_v16 }
  0x36   : > { %2350 = vmatmul.mubr.bf16.vlgmr.msra.gmra.mrb[0].mxu1 %v2971_v21  ;;  %2334 = vmatmul.mubr.bf16.vlgmr.msra.gmra.mrb[0].mxu0 %v2981_v26 }
  0x37   : > { %2366 = vmatpush3.bf16.msra.mxu1 %v2526_v16  ;;  %2353 = vmatprep.mubr.bf16.mxu1 %v2976_v23 }
  0x38   : > { %2367 = vmatprep.subr.bf16.mxu1 %v2527_v22  ;;  %2337 = vmatprep.mubr.bf16.mxu0 %v2986_v29 }
  0x3b   : > { %2368 = vmatpush3.bf16.msra.mxu1 %v2527_v22 }
  0x3c   : > { %2369 = vmatprep.subr.bf16.mxu1 %v2528_v30 }
  0x3e   : > { %2354 = vmatmul.mubr.bf16.gmra.mrb[4].mxu1 %v2995_v33  ;;  %2338 = vmatmul.mubr.bf16.gmra.mrb[4].mxu0 %v3007_v40 }
  0x3f   : > { %2370 = vmatpush3.bf16.msra.mxu1 %v2528_v30  ;;  %2357 = vmatprep.mubr.bf16.mxu1 %v2997_v34 }
  0x40   : > { %2371 = vmatprep.subr.bf16.mxu1 %v2529_v37  ;;  %2341 = vmatprep.mubr.bf16.mxu0 %v3012_v43 }
  0x43   : > { %2372 = vmatpush3.bf16.msra.mxu1 %v2529_v37 }
  0x44   : > { %2373 = vmatprep.subr.bf16.mxu1 %v2530_v44 }
  0x46   : > { %2358 = vmatmul.mubr.bf16.gmra.mrb[8].mxu1 %v3021_v47  ;;  %2342 = vmatmul.mubr.bf16.gmra.mrb[8].mxu0 %v3033_v54 }
  0x47   : > { %2374 = vmatpush3.bf16.msra.mxu1 %v2530_v44  ;;  %2361 = vmatprep.mubr.bf16.mxu1 %v3023_v48 }
  0x48   : > { %2375 = vmatprep.subr.bf16.mxu1 %v2531_v51  ;;  %2345 = vmatprep.mubr.bf16.mxu0 %v3038_v57 }
  0x4b   : > { %2376 = vmatpush3.bf16.msra.mxu1 %v2531_v51 }
  0x4c   : > { %2377 = vmatprep.subr.bf16.mxu1 %v2532_v58 }
  0x4e   : > { %2362 = vmatmul.mubr.bf16.gmra.mrb[12].mxu1 %v3045_v59  ;;  %2346 = vmatmul.mubr.bf16.gmra.mrb[12].mxu0 %v3053_v63 }
  0x4f   : > { %2378 = vmatpush3.bf16.msra.mxu1 %v2532_v58  ;;  %2381 = vmatprep.mubr.bf16.mxu1 %v2956_v12 }
  0x50   : > { %2379 = vmatprep.subr.bf16.mxu1 %v2533_v62  ;;  %2429 = vmatprep.mubr.bf16.mxu0 %v2956_v12 }
  0x53   : > { %2380 = vmatpush3.bf16.msra.mxu1 %v2533_v62 }
  0x56   : > { %2382 = vmatmul.mubr.bf16.vlgmr.msra.gmra.mrb[16].mxu1 %v2981_v26 }
  0x57   : > { %2385 = vmatprep.mubr.bf16.mxu1 %v2986_v29 }
  0x5e   : > { %2386 = vmatmul.mubr.bf16.gmra.mrb[20].mxu1 %v3007_v40 }
  0x5f   : > { %2389 = vmatprep.mubr.bf16.mxu1 %v3012_v43 }
  0x66   : > { %2390 = vmatmul.mubr.bf16.gmra.mrb[24].mxu1 %v3033_v54 }
  0x67   : > { %2393 = vmatprep.mubr.bf16.mxu1 %v3038_v57 }
  0x6e   : > { %2394 = vmatmul.mubr.bf16.gmra.mrb[28].mxu1 %v3053_v63 }
  0x6f   : > { %2397 = vmatprep.mubr.bf16.mxu1 %v2942_v6 }
  0x76   : > { %2398 = vmatmul.mubr.bf16.gmra.mrb[32].mxu1 %v2971_v21 }
  0x77   : > { %2401 = vmatprep.mubr.bf16.mxu1 %v2976_v23 }
  0x7e   : > { %2402 = vmatmul.mubr.bf16.gmra.mrb[36].mxu1 %v2995_v33 }
  0x7f   : > { %2405 = vmatprep.mubr.bf16.mxu1 %v2997_v34 }
  0x86   : > { %2406 = vmatmul.mubr.bf16.gmra.mrb[40].mxu1 %v3021_v47 }
  0x87   : > { %2409 = vmatprep.mubr.bf16.mxu1 %v3023_v48 }
  0x8e   : > { %2410 = vmatmul.mubr.bf16.gmra.mrb[44].mxu1 %v3045_v59 }
 0x109   : > { %v2351_v1 = vpop.f32.mrb[0].mxu1  ;;  %v2335_v7 = vpop.f32.mrb[0].mxu0 }
 0x10a   : > { %v504_v2 = vadd.f32 %v2351_v1, %v3076_v0  ;;  %v495_v3 = vpop.f32.mrb[1].mxu1  ;;  %v440_v10 = vadd.f32 %v2335_v7, %v3076_v0  ;;  %v431_v11 = vpop.f32.mrb[1].mxu0 }
 0x10b   : > { %v496_v4 = vadd.f32 %v3076_v0, %v495_v3  ;;  %v2352_v5 = vpop.f32.mrb[2].mxu1  ;;  %v432_v13 = vadd.f32 %v3076_v0, %v431_v11  ;;  %v2336_v14 = vpop.f32.mrb[2].mxu0 }
 0x10c   : > { %v507_v8 = vadd.f32 %v2352_v5, %v3076_v0  ;;  %v498_v9 = vpop.f32.mrb[3].mxu1  ;;  %v443_v16 = vadd.f32 %v2336_v14, %v3076_v0  ;;  %v434_v17 = vpop.f32.mrb[3].mxu0 }
 0x10d   : > { %v499_v12 = vadd.f32 %v3076_v0, %v498_v9  ;;  %v435_v19 = vadd.f32 %v3076_v0, %v434_v17 }
 0x10e   : > { %v3084_v15 = vpack.c.bf16 %v507_v8, %v504_v2  ;;  %v3090_v20 = vpack.c.bf16 %v443_v16, %v440_v10 }
 0x10f   : > { %v3087_v18 = vpack.c.bf16 %v499_v12, %v496_v4  ;;  %v3092_v24 = vpack.c.bf16 %v435_v19, %v432_v13 }
 0x111   : > { %v2355_v22 = vpop.f32.mrb[4].mxu1  ;;  %2173 = vmatprep.mubr.bf16.mxu1 %v3092_v24  ;;  %v2339_v31 = vpop.f32.mrb[4].mxu0 }
 0x112   : > { %v520_v25 = vadd.f32 %v2355_v22, %v3076_v0  ;;  %v511_v27 = vpop.f32.mrb[5].mxu1  ;;  %v456_v36 = vadd.f32 %v2339_v31, %v3076_v0  ;;  %v447_v37 = vpop.f32.mrb[5].mxu0 }
 0x113   : > { %v512_v28 = vadd.f32 %v3076_v0, %v511_v27  ;;  %v2356_v30 = vpop.f32.mrb[6].mxu1  ;;  %v448_v39 = vadd.f32 %v3076_v0, %v447_v37  ;;  %v2340_v45 = vpop.f32.mrb[6].mxu0 }
 0x114   : > { %v523_v32 = vadd.f32 %v2356_v30, %v3076_v0  ;;  %v514_v35 = vpop.f32.mrb[7].mxu1  ;;  %v459_v50 = vadd.f32 %v2340_v45, %v3076_v0  ;;  %v450_v51 = vpop.f32.mrb[7].mxu0 }
 0x115   : > { %v515_v38 = vadd.f32 %v3076_v0, %v514_v35  ;;  %v451_v55 = vadd.f32 %v3076_v0, %v450_v51 }
 0x116   : > { %v3101_v41 = vpack.c.bf16 %v523_v32, %v520_v25  ;;  %v3110_v60 = vpack.c.bf16 %v459_v50, %v456_v36  ;;  %v3132_v25 = vld [vmem:[%s4057_s5] ss:$0 sm:$0xff] }
 0x117   : > { %v3103_v42 = vpack.c.bf16 %v515_v38, %v512_v28  ;;  %v3113_v62 = vpack.c.bf16 %v451_v55, %v448_v39 }
 0x119   : > { %v2359_v44 = vpop.f32.mrb[8].mxu1  ;;  %v2343_v7 = vpop.f32.mrb[8].mxu0 }
 0x11a   : > { %v536_v46 = vadd.f32 %v2359_v44, %v3076_v0  ;;  %v527_v49 = vpop.f32.mrb[9].mxu1  ;;  %v472_v10 = vadd.f32 %v2343_v7, %v3076_v0  ;;  %v463_v11 = vpop.f32.mrb[9].mxu0 }
 0x11b   : > { %v528_v52 = vadd.f32 %v3076_v0, %v527_v49  ;;  %v2360_v53 = vpop.f32.mrb[10].mxu1  ;;  %v464_v14 = vadd.f32 %v3076_v0, %v463_v11  ;;  %v2344_v27 = vpop.f32.mrb[10].mxu0 }
 0x11c   : > { %v539_v56 = vadd.f32 %v2360_v53, %v3076_v0  ;;  %v530_v58 = vpop.f32.mrb[11].mxu1  ;;  %v475_v30 = vadd.f32 %v2344_v27, %v3076_v0  ;;  %v466_v31 = vpop.f32.mrb[11].mxu0 }
 0x11d   : > { %v531_v61 = vadd.f32 %v3076_v0, %v530_v58  ;;  %v467_v35 = vadd.f32 %v3076_v0, %v466_v31 }
 0x11e   : > { %v3115_v1 = vpack.c.bf16 %v539_v56, %v536_v46  ;;  %v3142_v39 = vpack.c.bf16 %v475_v30, %v472_v10 }
 0x11f   : > { %v3117_v2 = vpack.c.bf16 %v531_v61, %v528_v52  ;;  %v3146_v46 = vpack.c.bf16 %v467_v35, %v464_v14 }
 0x121   : > { %v2363_v3 = vpop.f32.mrb[12].mxu1  ;;  %v2347_v52 = vpop.f32.mrb[12].mxu0 }
 0x122   : > { %v552_v4 = vadd.f32 %v2363_v3, %v3076_v0  ;;  %v543_v5 = vpop.f32.mrb[13].mxu1  ;;  %v488_v55 = vadd.f32 %v2347_v52, %v3076_v0  ;;  %v479_v56 = vpop.f32.mrb[13].mxu0 }
 0x123   : > { %v544_v8 = vadd.f32 %v3076_v0, %v543_v5  ;;  %v2364_v9 = vpop.f32.mrb[14].mxu1  ;;  %v480_v61 = vadd.f32 %v3076_v0, %v479_v56 }
 0x124   : > { %v555_v12 = vadd.f32 %v2364_v9, %v3076_v0  ;;  %v546_v13 = vpop.f32.mrb[15].mxu1 }
 0x125   : > { %v547_v16 = vadd.f32 %v3076_v0, %v546_v13 }
 0x126   : > { %v3125_v17 = vpack.c.bf16 %v555_v12, %v552_v4  ;;  %v2348_v12 = vpop.f32.mrb[14].mxu0 }
 0x127   : > { %v3127_v19 = vpack.c.bf16 %v547_v16, %v544_v8  ;;  %v491_v14 = vadd.f32 %v2348_v12, %v3076_v0  ;;  %v482_v16 = vpop.f32.mrb[15].mxu0 }
 0x128   : > { %v483_v27 = vadd.f32 %v3076_v0, %v482_v16 }
 0x129   : > { %v2383_v22 = vpop.f32.mrb[16].mxu1 }
 0x12a   : > { %v663_v28 = vpop.f32.mrb[17].mxu1  ;;  %v3137_v36 = vadd.f32 %v2383_v22, %v3132_v25 }
 0x12b   : > { %v2384_v32 = vpop.f32.mrb[18].mxu1  ;;  %v664_v44 = vadd.f32 %v3132_v25, %v663_v28 }
 0x12c   : > { %v3140_v37 = vadd.f32 %v2384_v32, %v3132_v25  ;;  %v666_v38 = vpop.f32.mrb[19].mxu1  ;;  %v3176_v32 = vpack.c.bf16 %v491_v14, %v488_v55 }
 0x12d   : > { %v667_v45 = vadd.f32 %v3132_v25, %v666_v38 }
 0x12e   : > { %v1039_v49 = vpack.c.bf16 %v3140_v37, %v3137_v36 }
 0x12f   : > { %v1038_v50 = vpack.c.bf16 %v667_v45, %v664_v44  ;;  %v3184_v44 = vpack.c.bf16 %v483_v27, %v480_v61 }
 0x131   : > { %v2387_v51 = vpop.f32.mrb[20].mxu1 }
 0x132   : > { %v679_v53 = vpop.f32.mrb[21].mxu1  ;;  %v3153_v3 = vadd.f32 %v2387_v51, %v3132_v25 }
 0x133   : > { %v2388_v58 = vpop.f32.mrb[22].mxu1  ;;  %v3159_v7 = vadd.f32 %v3132_v25, %v679_v53 }
 0x134   : > { %v3156_v4 = vadd.f32 %v2388_v58, %v3132_v25  ;;  %v682_v5 = vpop.f32.mrb[23].mxu1 }
 0x135   : > { %v3162_v8 = vadd.f32 %v3132_v25, %v682_v5 }
 0x136   : > { %v1041_v9 = vpack.c.bf16 %v3156_v4, %v3153_v3 }
 0x137   : > { %v1040_v10 = vpack.c.bf16 %v3162_v8, %v3159_v7 }
 0x139   : > { %v2391_v11 = vpop.f32.mrb[24].mxu1 }
 0x13a   : > { %v695_v13 = vpop.f32.mrb[25].mxu1  ;;  %v3171_v28 = vadd.f32 %v2391_v11, %v3132_v25 }
 0x13b   : > { %v2392_v22 = vpop.f32.mrb[26].mxu1  ;;  %v3179_v35 = vadd.f32 %v3132_v25, %v695_v13 }
 0x13c   : > { %v3174_v30 = vadd.f32 %v2392_v22, %v3132_v25  ;;  %v698_v31 = vpop.f32.mrb[27].mxu1 }
 0x13d   : > { %v3182_v38 = vadd.f32 %v3132_v25, %v698_v31 }
 0x13e   : > { %v1043_v0 = vpack.c.bf16 %v3174_v30, %v3171_v28 }
 0x13f   : > { %v1042_v45 = vpack.c.bf16 %v3182_v38, %v3179_v35 }
 0x141   : > { %v2395_v51 = vpop.f32.mrb[28].mxu1 }
 0x142   : > { %v711_v52 = vpop.f32.mrb[29].mxu1  ;;  %v720_v55 = vadd.f32 %v2395_v51, %v3132_v25 }
 0x143   : > { %v2396_v53 = vpop.f32.mrb[30].mxu1  ;;  %v712_v5 = vadd.f32 %v3132_v25, %v711_v52 }
 0x144   : > { %v723_v56 = vadd.f32 %v2396_v53, %v3132_v25  ;;  %v714_v58 = vpop.f32.mrb[31].mxu1 }
 0x145   : > { %v715_v7 = vadd.f32 %v3132_v25, %v714_v58 }
 0x146   : > { %v1045_v61 = vpack.c.bf16 %v723_v56, %v720_v55 }
 0x147   : > { %v1044_v8 = vpack.c.bf16 %v715_v7, %v712_v5 }
 0x149   : > { %v2399_v11 = vpop.f32.mrb[32].mxu1 }
 0x14a   : > { %v727_v12 = vpop.f32.mrb[33].mxu1  ;;  %v736_v14 = vadd.f32 %v2399_v11, %v3132_v25 }
 0x14b   : > { %v2400_v13 = vpop.f32.mrb[34].mxu1  ;;  %v728_v27 = vadd.f32 %v3132_v25, %v727_v12 }
 0x14c   : > { %v739_v16 = vadd.f32 %v2400_v13, %v3132_v25  ;;  %v730_v22 = vpop.f32.mrb[35].mxu1 }
 0x14d   : > { %v731_v28 = vadd.f32 %v3132_v25, %v730_v22 }
 0x14e   : > { %v1047_v30 = vpack.c.bf16 %v739_v16, %v736_v14 }
 0x14f   : > { %v1046_v31 = vpack.c.bf16 %v731_v28, %v728_v27 }
 0x151   : > { %2157 = vmatprep.subr.bf16.mxu1 %v1046_v31  ;;  %v2403_v35 = vpop.f32.mrb[36].mxu1 }
 0x152   : > { %2158 = vmatpush3.bf16.xpose.msra.mxu1 %v1038_v50  ;;  %v752_v38 = vadd.f32 %v2403_v35, %v3132_v25  ;;  %v743_v51 = vpop.f32.mrb[37].mxu1 }
 0x153   : > { %2159 = vmatprep.subr.bf16.mxu1 %v1047_v30  ;;  %v744_v52 = vadd.f32 %v3132_v25, %v743_v51  ;;  %v2404_v53 = vpop.f32.mrb[38].mxu1 }
 0x154   : > { %v755_v55 = vadd.f32 %v2404_v53, %v3132_v25  ;;  %v746_v56 = vpop.f32.mrb[39].mxu1 }
 0x155   : > { %v747_v58 = vadd.f32 %v3132_v25, %v746_v56 }
 0x156   : > { %v1049_v5 = vpack.c.bf16 %v755_v55, %v752_v38 }
 0x157   : > { %v1048_v7 = vpack.c.bf16 %v747_v58, %v744_v52 }
 0x159   : > { %v2407_v11 = vpop.f32.mrb[40].mxu1 }
 0x15a   : > { %2160 = vmatpush3.bf16.xpose.msra.mxu1 %v1039_v49  ;;  %v768_v50 = vadd.f32 %v2407_v11, %v3132_v25  ;;  %v759_v12 = vpop.f32.mrb[41].mxu1 }
 0x15b   : > { %2161 = vmatprep.subr.bf16.mxu1 %v1048_v7  ;;  %v760_v13 = vadd.f32 %v3132_v25, %v759_v12  ;;  %v2408_v14 = vpop.f32.mrb[42].mxu1 }
 0x15c   : > { %v771_v16 = vadd.f32 %v2408_v14, %v3132_v25  ;;  %v762_v22 = vpop.f32.mrb[43].mxu1 }
 0x15d   : > { %v763_v27 = vadd.f32 %v3132_v25, %v762_v22 }
 0x15e   : > { %v1051_v28 = vpack.c.bf16 %v771_v16, %v768_v50 }
 0x15f   : > { %v1050_v30 = vpack.c.bf16 %v763_v27, %v760_v13 }
 0x161   : > { %v2411_v31 = vpop.f32.mrb[44].mxu1 }
 0x162   : > { %2162 = vmatpush3.bf16.xpose.msra.mxu1 %v1040_v10  ;;  %v784_v35 = vadd.f32 %v2411_v31, %v3132_v25  ;;  %v775_v36 = vpop.f32.mrb[45].mxu1 }
 0x163   : > { %2163 = vmatprep.subr.bf16.mxu1 %v1049_v5  ;;  %v776_v37 = vadd.f32 %v3132_v25, %v775_v36  ;;  %v2412_v49 = vpop.f32.mrb[46].mxu1 }
 0x164   : > { %v787_v38 = vadd.f32 %v2412_v49, %v3132_v25  ;;  %v778_v51 = vpop.f32.mrb[47].mxu1 }
 0x165   : > { %v779_v52 = vadd.f32 %v3132_v25, %v778_v51 }
 0x166   : > { %v1053_v53 = vpack.c.bf16 %v787_v38, %v784_v35 }
 0x167   : > { %v1052_v55 = vpack.c.bf16 %v779_v52, %v776_v37 }
 0x16a   : > { %2164 = vmatpush3.bf16.xpose.msra.mxu1 %v1041_v9 }
 0x16b   : > { %2165 = vmatprep.subr.bf16.mxu1 %v1050_v30 }
 0x172   : > { %2166 = vmatpush3.bf16.xpose.msra.mxu1 %v1042_v45 }
 0x173   : > { %2167 = vmatprep.subr.bf16.mxu1 %v1051_v28 }
 0x17a   : > { %2168 = vmatpush3.bf16.xpose.msra.mxu1 %v1043_v0 }
 0x17b   : > { %2169 = vmatprep.subr.bf16.mxu1 %v1052_v55 }
 0x182   : > { %2170 = vmatpush3.bf16.xpose.msra.mxu1 %v1044_v8 }
 0x183   : > { %2171 = vmatprep.subr.bf16.mxu1 %v1053_v53 }
 0x18a   : > { %2172 = vmatpush3.bf16.xpose.msra.mxu1 %v1045_v61 }
 0x191   : > { %2174 = vmatmul.mubr.bf16.vlgmr.msra.gmra.mrb[48].mxu1 %v3092_v24  ;;  %v2537_v24 = vld [vmem:[%s4055_s3 + $0x18] sm:$0xff]  }
 0x192   : > { %2175 = vmatprep.mubr.bf16.mxu1 %v3090_v20 }
 0x199   : > { %2176 = vmatmul.mubr.bf16.gmra.mrb[52].mxu1 %v3090_v20  ;;  %v2534_v20 = vld [vmem:[%s4055_s3] sm:$0xff]  }
 0x19a   : > { %2177 = vmatprep.mubr.bf16.mxu1 %v3113_v62  ;;  %2413 = vmatprep.subr.bf16.mxu0 %v2534_v20 }
 0x19b   : > { %2414 = vmatpush3.bf16.msra.mxu0 %v2534_v20 }
 0x1a1   : > { %2178 = vmatmul.mubr.bf16.gmra.mrb[56].mxu1 %v3113_v62  ;;  %v2541_v62 = vld [vmem:[%s4055_s3 + $0x38] sm:$0xff]  }
 0x1a2   : > { %2179 = vmatprep.mubr.bf16.mxu1 %v3110_v60 }
 0x1a9   : > { %2180 = vmatmul.mubr.bf16.gmra.mrb[60].mxu1 %v3110_v60  ;;  %v2540_v60 = vld [vmem:[%s4055_s3 + $0x30] sm:$0xff]  }
 0x1aa   : > { %2181 = vmatprep.mubr.bf16.mxu1 %v3146_v46 }
 0x1b1   : > { %2182 = vmatmul.mubr.bf16.gmra.mrb[64].mxu1 %v3146_v46 }
 0x1b2   : > { %2183 = vmatprep.mubr.bf16.mxu1 %v3142_v39 }
 0x1b9   : > { %2184 = vmatmul.mubr.bf16.gmra.mrb[68].mxu1 %v3142_v39 }
 0x1ba   : > { %2185 = vmatprep.mubr.bf16.mxu1 %v3184_v44 }
 0x1c1   : > { %2186 = vmatmul.mubr.bf16.gmra.mrb[72].mxu1 %v3184_v44 }
 0x1c2   : > { %2187 = vmatprep.mubr.bf16.mxu1 %v3176_v32 }
 0x1c9   : > { %2188 = vmatmul.mubr.bf16.gmra.mrb[76].mxu1 %v3176_v32 }
 0x1ca   : > { %2189 = vmatprep.mubr.bf16.mxu1 %v3087_v18 }
 0x1d1   : > { %2190 = vmatmul.mubr.bf16.gmra.mrb[80].mxu1 %v3087_v18  ;;  %v2536_v18 = vld [vmem:[%s4055_s3 + $0x10] sm:$0xff]  }
 0x1d2   : > { %2191 = vmatprep.mubr.bf16.mxu1 %v3084_v15 }
 0x1d9   : > { %2192 = vmatmul.mubr.bf16.gmra.mrb[84].mxu1 %v3084_v15  ;;  %v2535_v15 = vld [vmem:[%s4055_s3 + $0x8] sm:$0xff]  }
 0x1da   : > { %2193 = vmatprep.mubr.bf16.mxu1 %v3103_v42  ;;  %2415 = vmatprep.subr.bf16.mxu0 %v2535_v15 }
 0x1db   : > { %2416 = vmatpush3.bf16.msra.mxu0 %v2535_v15 }
 0x1dc   : > { %2417 = vmatprep.subr.bf16.mxu0 %v2536_v18 }
 0x1df   : > { %2418 = vmatpush3.bf16.msra.mxu0 %v2536_v18 }
 0x1e0   : > { %2419 = vmatprep.subr.bf16.mxu0 %v2537_v24 }
 0x1e1   : > { %2194 = vmatmul.mubr.bf16.gmra.mrb[88].mxu1 %v3103_v42  ;;  %v2539_v42 = vld [vmem:[%s4055_s3 + $0x28] sm:$0xff]  }
 0x1e2   : > { %2195 = vmatprep.mubr.bf16.mxu1 %v3101_v41 }
 0x1e3   : > { %2420 = vmatpush3.bf16.msra.mxu0 %v2537_v24 }
 0x1e9   : > { %2196 = vmatmul.mubr.bf16.gmra.mrb[92].mxu1 %v3101_v41  ;;  %v2538_v41 = vld [vmem:[%s4055_s3 + $0x20] sm:$0xff]  }
 0x1ea   : > { %2197 = vmatprep.mubr.bf16.mxu1 %v3117_v2  ;;  %2421 = vmatprep.subr.bf16.mxu0 %v2538_v41 }
 0x1eb   : > { %2422 = vmatpush3.bf16.msra.mxu0 %v2538_v41 }
 0x1ec   : > { %2423 = vmatprep.subr.bf16.mxu0 %v2539_v42 }
 0x1ef   : > { %2424 = vmatpush3.bf16.msra.mxu0 %v2539_v42 }
 0x1f0   : > { %2425 = vmatprep.subr.bf16.mxu0 %v2540_v60 }
 0x1f1   : > { %2198 = vmatmul.mubr.bf16.gmra.mrb[96].mxu1 %v3117_v2 }
 0x1f2   : > { %2199 = vmatprep.mubr.bf16.mxu1 %v3115_v1 }
 0x1f3   : > { %2426 = vmatpush3.bf16.msra.mxu0 %v2540_v60 }
 0x1f4   : > { %2427 = vmatprep.subr.bf16.mxu0 %v2541_v62 }
 0x1f7   : > { %2428 = vmatpush3.bf16.msra.mxu0 %v2541_v62 }
 0x1f9   : > { %2200 = vmatmul.mubr.bf16.gmra.mrb[100].mxu1 %v3115_v1 }
 0x1fa   : > { %2201 = vmatprep.mubr.bf16.mxu1 %v3127_v19  ;;  %2430 = vmatmul.mubr.bf16.vlgmr.msra.gmra.mrb[16].mxu0 %v2981_v26 }
 0x1fb   : > { %2433 = vmatprep.mubr.bf16.mxu0 %v2986_v29 }
 0x201   : > { %2202 = vmatmul.mubr.bf16.gmra.mrb[104].mxu1 %v3127_v19 }
 0x202   : > { %2203 = vmatprep.mubr.bf16.mxu1 %v3125_v17  ;;  %2434 = vmatmul.mubr.bf16.gmra.mrb[20].mxu0 %v3007_v40 }
 0x203   : > { %2437 = vmatprep.mubr.bf16.mxu0 %v3012_v43 }
 0x209   : > { %2204 = vmatmul.mubr.bf16.gmra.mrb[108].mxu1 %v3125_v17 }
 0x20a   : > { %2438 = vmatmul.mubr.bf16.gmra.mrb[24].mxu0 %v3033_v54 }
 0x20b   : > { %2441 = vmatprep.mubr.bf16.mxu0 %v3038_v57 }
 0x212   : > { %2442 = vmatmul.mubr.bf16.gmra.mrb[28].mxu0 %v3053_v63 }
 0x213   : > { %2445 = vmatprep.mubr.bf16.mxu0 %v2942_v6 }
 0x21a   : > { %2446 = vmatmul.mubr.bf16.gmra.mrb[32].mxu0 %v2971_v21 }
 0x21b   : > { %2449 = vmatprep.mubr.bf16.mxu0 %v2976_v23 }
 0x222   : > { %2450 = vmatmul.mubr.bf16.gmra.mrb[36].mxu0 %v2995_v33 }
 0x223   : > { %2453 = vmatprep.mubr.bf16.mxu0 %v2997_v34 }
 0x22a   : > { %2454 = vmatmul.mubr.bf16.gmra.mrb[40].mxu0 %v3021_v47 }
 0x22b   : > { %2457 = vmatprep.mubr.bf16.mxu0 %v3023_v48 }
 0x232   : > { %2458 = vmatmul.mubr.bf16.gmra.mrb[44].mxu0 %v3045_v59 }
 0x264   : > { %v3286_v26 = vpop.f32.mrb[48].mxu1 }
 0x265   : > { %v3288_v29 = vpop.f32.mrb[49].mxu1 }
 0x266   : > { %v3290_v40 = vpop.f32.mrb[50].mxu1  ;;  %v1247_v6 = vmax.f32 %v3286_v26, %v3288_v29 }
 0x267   : > { %v3294_v21 = vpop.f32.mrb[51].mxu1 }
 0x268   : > { %1248 = vmax.xlane.f32.xlu0 %v1247_v6  ;;  %v1250_v23 = vmax.f32 %v3290_v40, %v3294_v21 }
 0x26c   : > { %1251 = vmax.xlane.f32.xlu0 %v1250_v23  ;;  %v3298_v33 = vpop.f32.mrb[52].mxu1 }
 0x26d   : > { %v3300_v34 = vpop.f32.mrb[53].mxu1 }
 0x26e   : > { %v3302_v43 = vpop.f32.mrb[54].mxu1  ;;  %v1253_v47 = vmax.f32 %v3298_v33, %v3300_v34 }
 0x26f   : > { %v3306_v48 = vpop.f32.mrb[55].mxu1 }
 0x270   : > { %1254 = vmax.xlane.f32.xlu1 %v1253_v47  ;;  %v1256_v54 = vmax.f32 %v3302_v43, %v3306_v48 }
 0x274   : > { %1257 = vmax.xlane.f32.xlu1 %v1256_v54  ;;  %v3310_v57 = vpop.f32.mrb[56].mxu1 }
 0x275   : > { %v3312_v59 = vpop.f32.mrb[57].mxu1 }
 0x276   : > { %v3314_v63 = vpop.f32.mrb[58].mxu1  ;;  %v1259_v1 = vmax.f32 %v3310_v57, %v3312_v59 }
 0x277   : > { %v3318_v2 = vpop.f32.mrb[59].mxu1 }
 0x278   : > { %1260 = vmax.xlane.f32.xlu0 %v1259_v1  ;;  %v1262_v17 = vmax.f32 %v3314_v63, %v3318_v2 }
 0x27a   : > { %1263 = vmax.xlane.f32.xlu1 %v1262_v17 }
 0x27c   : > { %v3322_v19 = vpop.f32.mrb[60].mxu1 }
 0x27d   : > { %v3324_v25 = vpop.f32.mrb[61].mxu1 }
 0x27e   : > { %v3326_v39 = vpop.f32.mrb[62].mxu1  ;;  %v1265_v46 = vmax.f32 %v3322_v19, %v3324_v25 }
 0x27f   : > { %v3330_v3 = vpop.f32.mrb[63].mxu1 }
 0x280   : > { %1266 = vmax.xlane.f32.xlu0 %v1265_v46  ;;  %v1268_v4 = vmax.f32 %v3326_v39, %v3330_v3 }
 0x282   : > { %1269 = vmax.xlane.f32.xlu1 %v1268_v4 }
 0x284   : > { %v3334_v9 = vpop.f32.mrb[64].mxu1 }
 0x285   : > { %v3336_v10 = vpop.f32.mrb[65].mxu1 }
 0x286   : > { %v3338_v32 = vpop.f32.mrb[66].mxu1  ;;  %v1271_v44 = vmax.f32 %v3334_v9, %v3336_v10 }
 0x287   : > { %v3342_v0 = vpop.f32.mrb[67].mxu1 }
 0x288   : > { %1272 = vmax.xlane.f32.xlu0 %v1271_v44  ;;  %v1274_v45 = vmax.f32 %v3338_v32, %v3342_v0 }
 0x28a   : > { %1275 = vmax.xlane.f32.xlu1 %v1274_v45 }
 0x28c   : > { %v3346_v61 = vpop.f32.mrb[68].mxu1 }
 0x28d   : > { %v3348_v8 = vpop.f32.mrb[69].mxu1 }
 0x28e   : > { %v3350_v56 = vpop.f32.mrb[70].mxu1  ;;  %v1277_v58 = vmax.f32 %v3346_v61, %v3348_v8 }
 0x28f   : > { %v3354_v5 = vpop.f32.mrb[71].mxu1 }
 0x290   : > { %1278 = vmax.xlane.f32.xlu0 %v1277_v58  ;;  %v1280_v7 = vmax.f32 %v3350_v56, %v3354_v5 }
 0x292   : > { %1281 = vmax.xlane.f32.xlu1 %v1280_v7 }
 0x294   : > { %v3358_v11 = vpop.f32.mrb[72].mxu1 }
 0x295   : > { %4109 = vst [vmem:[#allocation5_spill] sm:$0xff] %v3358_v11  ;;  %v3360_v50 = vpop.f32.mrb[73].mxu1 }
 0x296   : > { %4110 = vst [vmem:[#allocation6_spill] sm:$0xff] %v3360_v50  ;;  %v3362_v12 = vpop.f32.mrb[74].mxu1  ;;  %v1283_v13 = vmax.f32 %v3358_v11, %v3360_v50 }
 0x297   : > { %4111 = vst [vmem:[#allocation7_spill] sm:$0xff] %v3362_v12  ;;  %v3366_v14 = vpop.f32.mrb[75].mxu1 }
 0x298   : > { %4112 = vst [vmem:[#allocation8_spill] sm:$0xff] %v3366_v14  ;;  %1284 = vmax.xlane.f32.xlu0 %v1283_v13  ;;  %v1286_v16 = vmax.f32 %v3362_v12, %v3366_v14 }
 0x29a   : > { %1287 = vmax.xlane.f32.xlu1 %v1286_v16 }
 0x29c   : > { %v3370_v22 = vpop.f32.mrb[76].mxu1 }
 0x29d   : > { %4113 = vst [vmem:[#allocation9_spill] sm:$0xff] %v3370_v22  ;;  %v3372_v27 = vpop.f32.mrb[77].mxu1 }
 0x29e   : > { %4114 = vst [vmem:[#allocation10_spill] sm:$0xff] %v3372_v27  ;;  %v3374_v28 = vpop.f32.mrb[78].mxu1  ;;  %v1289_v30 = vmax.f32 %v3370_v22, %v3372_v27 }
 0x29f   : > { %4115 = vst [vmem:[#allocation11_spill] sm:$0xff] %v3374_v28  ;;  %v3378_v31 = vpop.f32.mrb[79].mxu1 }
 0x2a0   : > { %4116 = vst [vmem:[#allocation12_spill] sm:$0xff] %v3378_v31  ;;  %1290 = vmax.xlane.f32.xlu0 %v1289_v30  ;;  %v1292_v35 = vmax.f32 %v3374_v28, %v3378_v31 }
 0x2a2   : > { %1293 = vmax.xlane.f32.xlu1 %v1292_v35 }
 0x2a4   : > { %v3382_v36 = vpop.f32.mrb[80].mxu1 }
 0x2a5   : > { %4117 = vst [vmem:[#allocation13_spill] sm:$0xff] %v3382_v36  ;;  %v3384_v37 = vpop.f32.mrb[81].mxu1 }
 0x2a6   : > { %4118 = vst [vmem:[#allocation14_spill] sm:$0xff] %v3384_v37  ;;  %v3386_v49 = vpop.f32.mrb[82].mxu1  ;;  %v1295_v38 = vmax.f32 %v3382_v36, %v3384_v37 }
 0x2a7   : > { %4119 = vst [vmem:[#allocation15_spill] sm:$0xff] %v3386_v49  ;;  %v3390_v51 = vpop.f32.mrb[83].mxu1 }
 0x2a8   : > { %4120 = vst [vmem:[#allocation16_spill] sm:$0xff] %v3390_v51  ;;  %1296 = vmax.xlane.f32.xlu0 %v1295_v38  ;;  %v1298_v52 = vmax.f32 %v3386_v49, %v3390_v51 }
 0x2aa   : > { %1299 = vmax.xlane.f32.xlu1 %v1298_v52 }
 0x2ac   : > { %v3394_v53 = vpop.f32.mrb[84].mxu1 }
 0x2ad   : > { %4121 = vst [vmem:[#allocation17_spill] sm:$0xff] %v3394_v53  ;;  %v3396_v55 = vpop.f32.mrb[85].mxu1 }
 0x2ae   : > { %4122 = vst [vmem:[#allocation18_spill] sm:$0xff] %v3396_v55  ;;  %v3398_v20 = vpop.f32.mrb[86].mxu1  ;;  %v1301_v15 = vmax.f32 %v3394_v53, %v3396_v55 }
 0x2af   : > { %4123 = vst [vmem:[#allocation19_spill] sm:$0xff] %v3398_v20  ;;  %v3402_v18 = vpop.f32.mrb[87].mxu1 }
 0x2b0   : > { %4124 = vst [vmem:[#allocation20_spill] sm:$0xff] %v3402_v18  ;;  %1302 = vmax.xlane.f32.xlu0 %v1301_v15  ;;  %v1304_v24 = vmax.f32 %v3398_v20, %v3402_v18 }
 0x2b2   : > { %1305 = vmax.xlane.f32.xlu1 %v1304_v24 }
 0x2b4   : > { %v3406_v41 = vpop.f32.mrb[88].mxu1 }
 0x2b5   : > { %4125 = vst [vmem:[#allocation21_spill] sm:$0xff] %v3406_v41  ;;  %v3408_v42 = vpop.f32.mrb[89].mxu1 }
 0x2b6   : > { %4126 = vst [vmem:[#allocation22_spill] sm:$0xff] %v3408_v42  ;;  %v3410_v60 = vpop.f32.mrb[90].mxu1  ;;  %v1307_v62 = vmax.f32 %v3406_v41, %v3408_v42 }
 0x2b7   : > { %4127 = vst [vmem:[#allocation23_spill] sm:$0xff] %v3410_v60  ;;  %v3414_v6 = vpop.f32.mrb[91].mxu1 }
 0x2b8   : > { %4128 = vst [vmem:[#allocation24_spill] sm:$0xff] %v3414_v6  ;;  %1308 = vmax.xlane.f32.xlu0 %v1307_v62  ;;  %v1310_v23 = vmax.f32 %v3410_v60, %v3414_v6  ;;  %v3481_v6 = vld [vmem:[%s4058_s6] ss:$0 sm:$0xff] }
 0x2ba   : > { %1311 = vmax.xlane.f32.xlu1 %v1310_v23 }
 0x2bc   : > { %v3418_v47 = vpop.f32.mrb[92].mxu1 }
 0x2bd   : > { %4129 = vst [vmem:[#allocation25_spill] sm:$0xff] %v3418_v47  ;;  %v3420_v54 = vpop.f32.mrb[93].mxu1 }
 0x2be   : > { %4130 = vst [vmem:[#allocation26_spill] sm:$0xff] %v3420_v54  ;;  %v3422_v1 = vpop.f32.mrb[94].mxu1  ;;  %v1313_v17 = vmax.f32 %v3418_v47, %v3420_v54 }
 0x2bf   : > { %4131 = vst [vmem:[#allocation27_spill] sm:$0xff] %v3422_v1  ;;  %v3426_v46 = vpop.f32.mrb[95].mxu1 }
 0x2c0   : > { %4132 = vst [vmem:[#allocation28_spill] sm:$0xff] %v3426_v46  ;;  %1314 = vmax.xlane.f32.xlu0 %v1313_v17  ;;  %v1316_v4 = vmax.f32 %v3422_v1, %v3426_v46 }
 0x2c2   : > { %1317 = vmax.xlane.f32.xlu1 %v1316_v4 }
 0x2c4   : > { %v3430_v44 = vpop.f32.mrb[96].mxu1 }
 0x2c5   : > { %v3432_v45 = vpop.f32.mrb[97].mxu1 }
 0x2c6   : > { %v3434_v58 = vpop.f32.mrb[98].mxu1 }
 0x2c7   : > { %v3438_v13 = vpop.f32.mrb[99].mxu1 }
 0x2cc   : > { %v3442_v30 = vpop.f32.mrb[100].mxu1 }
 0x2cd   : > { %v3444_v35 = vpop.f32.mrb[101].mxu1  ;;  %v2431_v4 = vpop.f32.mrb[16].mxu0 }
 0x2ce   : > { %v3446_v38 = vpop.f32.mrb[102].mxu1  ;;  %v3484_v7 = vadd.f32 %v2431_v4, %v3481_v6  ;;  %v895_v60 = vpop.f32.mrb[17].mxu0 }
 0x2cf   : > { %v3450_v15 = vpop.f32.mrb[103].mxu1  ;;  %v3487_v42 = vadd.f32 %v3481_v6, %v895_v60  ;;  %v2432_v41 = vpop.f32.mrb[18].mxu0 }
 0x2d0   : > { %v3490_v24 = vadd.f32 %v2432_v41, %v3481_v6  ;;  %v898_v18 = vpop.f32.mrb[19].mxu0 }
 0x2d1   : > { %v3493_v47 = vadd.f32 %v3481_v6, %v898_v18 }
 0x2d4   : > { %v3454_v62 = vpop.f32.mrb[104].mxu1 }
 0x2d5   : > { %v3456_v23 = vpop.f32.mrb[105].mxu1  ;;  %v2435_v20 = vpop.f32.mrb[20].mxu0 }
 0x2d6   : > { %v3458_v17 = vpop.f32.mrb[106].mxu1  ;;  %v3498_v53 = vadd.f32 %v2435_v20, %v3481_v6  ;;  %v911_v4 = vpop.f32.mrb[21].mxu0 }
 0x2d7   : > { %v3462_v16 = vpop.f32.mrb[107].mxu1  ;;  %v3503_v51 = vadd.f32 %v3481_v6, %v911_v4  ;;  %v2436_v41 = vpop.f32.mrb[22].mxu0 }
 0x2d8   : > { %v3506_v49 = vadd.f32 %v2436_v41, %v3481_v6  ;;  %v914_v18 = vpop.f32.mrb[23].mxu0 }
 0x2d9   : > { %v3509_v37 = vadd.f32 %v3481_v6, %v914_v18 }
 0x2dc   : > { %v3466_v52 = vpop.f32.mrb[108].mxu1 }
 0x2dd   : > { %4133 = vst [vmem:[#allocation29_spill] sm:$0xff] %v3466_v52  ;;  %v3468_v46 = vpop.f32.mrb[109].mxu1  ;;  %v2439_v36 = vpop.f32.mrb[24].mxu0 }
 0x2de   : > { %4134 = vst [vmem:[#allocation30_spill] sm:$0xff] %v3468_v46  ;;  %v3470_v1 = vpop.f32.mrb[110].mxu1  ;;  %v3516_v60 = vadd.f32 %v2439_v36, %v3481_v6  ;;  %v927_v4 = vpop.f32.mrb[25].mxu0 }
 0x2df   : > { %4135 = vst [vmem:[#allocation31_spill] sm:$0xff] %v3470_v1  ;;  %v3474_v54 = vpop.f32.mrb[111].mxu1  ;;  %v3519_v31 = vadd.f32 %v3481_v6, %v927_v4  ;;  %v2440_v41 = vpop.f32.mrb[26].mxu0 }
 0x2e0   : > { %4136 = vst [vmem:[#allocation32_spill] sm:$0xff] %v3474_v54  ;;  %v3522_v28 = vadd.f32 %v2440_v41, %v3481_v6  ;;  %v930_v18 = vpop.f32.mrb[27].mxu0 }
 0x2e1   : > { %v3525_v27 = vadd.f32 %v3481_v6, %v930_v18 }
 0x2e5   : > { %v2443_v22 = vpop.f32.mrb[28].mxu0 }
 0x2e6   : > { %v3534_v1 = vadd.f32 %v2443_v22, %v3481_v6  ;;  %v943_v41 = vpop.f32.mrb[29].mxu0 }
 0x2e7   : > { %v3537_v14 = vadd.f32 %v3481_v6, %v943_v41  ;;  %v2444_v18 = vpop.f32.mrb[30].mxu0 }
 0x2e8   : > { %4137 = vst [vmem:[#allocation33_spill] sm:$0xff] %v3534_v1  ;;  %v3540_v55 = vadd.f32 %v2444_v18, %v3481_v6  ;;  %v946_v20 = vpop.f32.mrb[31].mxu0 }
 0x2e9   : > { %v3543_v46 = vadd.f32 %v3481_v6, %v946_v20 }
 0x2ed   : > { %v2447_v18 = vpop.f32.mrb[32].mxu0 }
 0x2ee   : > { %v959_v52 = vpop.f32.mrb[33].mxu0 }
 0x2f5   : > { %v1249_v36 = vpop.xlane.xlu0 %1248 }
 0x2f6   : > { %v1343_v54 = vsub.f32 %v3286_v26, %v1249_v36  ;;  %v1344_v4 = vsub.f32 %v3288_v29, %v1249_v36 }
 0x2f8   : > { %v1407_v12 = vmul.f32 1.442695, %v1343_v54  ;;  %v1409_v50 = vmul.f32 1.442695, %v1344_v4 }
 0x2f9   : > { %v1252_v11 = vpop.xlane.xlu0 %1251 }
 0x2fa   : > { %2542 = vpow2.f32 %v1407_v12  ;;  %v1345_v26 = vsub.f32 %v3290_v40, %v1252_v11  ;;  %v1346_v29 = vsub.f32 %v3294_v21, %v1252_v11  ;;  %v968_v40 = vadd.f32 %v2447_v18, %v3481_v6  ;;  %v2448_v11 = vpop.f32.mrb[34].mxu0 }
 0x2fb   : > { %2544 = vpow2.f32 %v1409_v50  ;;  %v960_v21 = vadd.f32 %v3481_v6, %v959_v52  ;;  %v971_v54 = vadd.f32 %v2448_v11, %v3481_v6 }
 0x2fc   : > { %v1411_v36 = vmul.f32 1.442695, %v1345_v26  ;;  %v1413_v4 = vmul.f32 1.442695, %v1346_v29  ;;  %v962_v26 = vpop.f32.mrb[35].mxu0 }
 0x2fd   : > { %v1255_v41 = vpop.xlane.xlu1 %1254  ;;  %v963_v1 = vadd.f32 %v3481_v6, %v962_v26  ;;  %v2451_v11 = vpop.f32.mrb[36].mxu0 }
 0x2fe   : > { %2546 = vpow2.f32 %v1411_v36  ;;  %v1347_v20 = vsub.f32 %v3298_v33, %v1255_v41  ;;  %v1348_v12 = vsub.f32 %v3300_v34, %v1255_v41  ;;  %v1768_v36 = vpack.c.bf16 %v971_v54, %v968_v40 }
 0x2ff   : > { %2548 = vpow2.f32 %v1413_v4  ;;  %v1767_v41 = vpack.c.bf16 %v963_v1, %v960_v21  ;;  %v4138_v1 = vpack.c.bf16 %v3493_v47, %v3487_v42  ;;  %v984_v54 = vadd.f32 %v2451_v11, %v3481_v6 }
 0x300   : > { %v1415_v50 = vmul.f32 1.442695, %v1347_v20  ;;  %v1417_v22 = vmul.f32 1.442695, %v1348_v12  ;;  %v4139_v11 = vpack.c.bf16 %v3490_v24, %v3484_v7 }
 0x301   : > { %v1258_v29 = vpop.xlane.xlu1 %1257  ;;  %2205 = vmatprep.subr.bf16.mxu0 %v1767_v41 }
 0x302   : > { %2550 = vpow2.f32 %v1415_v50  ;;  %v1349_v33 = vsub.f32 %v3302_v43, %v1258_v29  ;;  %v1350_v34 = vsub.f32 %v3306_v48, %v1258_v29  ;;  %v975_v48 = vpop.f32.mrb[37].mxu0  ;;  %2206 = vmatpush3.bf16.msra.mxu0 %v4138_v1 }
 0x303   : > { %2552 = vpow2.f32 %v1417_v22  ;;  %v976_v40 = vadd.f32 %v3481_v6, %v975_v48  ;;  %v2452_v21 = vpop.f32.mrb[38].mxu0  ;;  %2207 = vmatprep.subr.bf16.mxu0 %v1768_v36 }
 0x304   : > { %v3559_v4 = vpop.eup %2542  ;;  %v1419_v52 = vmul.f32 1.442695, %v1349_v33  ;;  %v1421_v18 = vmul.f32 1.442695, %v1350_v34  ;;  %v978_v41 = vpop.f32.mrb[39].mxu0  ;;  %v987_v47 = vadd.f32 %v2452_v21, %v3481_v6 }
 0x305   : > { %v3561_v20 = vpop.eup %2544  ;;  %v1261_v12 = vpop.xlane.xlu0 %1260 }
 0x306   : > { %2554 = vpow2.f32 %v1419_v52  ;;  %v1351_v26 = vsub.f32 %v3310_v57, %v1261_v12  ;;  %v1352_v50 = vsub.f32 %v3312_v59, %v1261_v12  ;;  %v1535_v43 = vadd.f32 %v3561_v20, %v3559_v4  ;;  %2208 = vmatpush3.bf16.msra.mxu0 %v4139_v11  ;;  %v2455_v1 = vpop.f32.mrb[40].mxu0 }
 0x307   : > { %2556 = vpow2.f32 %v1421_v18  ;;  %v1264_v22 = vpop.xlane.xlu1 %1263  ;;  %v979_v52 = vadd.f32 %v3481_v6, %v978_v41 }
 0x308   : > { %v3572_v29 = vpop.eup %2546  ;;  %v1423_v57 = vmul.f32 1.442695, %v1351_v26  ;;  %v1425_v59 = vmul.f32 1.442695, %v1352_v50  ;;  %v1353_v33 = vsub.f32 %v3314_v63, %v1264_v22  ;;  %v1354_v34 = vsub.f32 %v3318_v2, %v1264_v22  ;;  %1536 = vadd.xlane.f32.xlu0 %v1535_v43 }
 0x309   : > { %v3576_v42 = vpop.eup %2548  ;;  %v1770_v63 = vpack.c.bf16 %v987_v47, %v984_v54  ;;  %v1769_v2 = vpack.c.bf16 %v979_v52, %v976_v40  ;;  %v4140_v50 = vmax.f32 %v3430_v44, %v3432_v45  ;;  %v991_v54 = vpop.f32.mrb[41].mxu0  ;;  %v4141_v40 = vpack.c.bf16 %v3509_v37, %v3503_v51 }
 0x30a   : > { %2558 = vpow2.f32 %v1423_v57  ;;  %v1427_v18 = vmul.f32 1.442695, %v1353_v33  ;;  %v1429_v12 = vmul.f32 1.442695, %v1354_v34  ;;  %v1538_v36 = vadd.f32 %v3576_v42, %v3572_v29  ;;  %v2456_v33 = vpop.f32.mrb[42].mxu0 }
 0x30b   : > { %2560 = vpow2.f32 %v1425_v59  ;;  %2209 = vmatprep.subr.bf16.mxu0 %v1769_v2  ;;  %v1000_v57 = vadd.f32 %v2455_v1, %v3481_v6  ;;  %v992_v59 = vadd.f32 %v3481_v6, %v991_v54  ;;  %v4142_v37 = vmax.f32 %v3434_v58, %v3438_v13  ;;  %v994_v51 = vpop.f32.mrb[43].mxu0 }
 0x30c   : > { %v3585_v26 = vpop.eup %2550  ;;  %2562 = vpow2.f32 %v1427_v18  ;;  %1539 = vadd.xlane.f32.xlu1 %v1538_v36  ;;  %1320 = vmax.xlane.f32.xlu0 %v4140_v50  ;;  %v1003_v18 = vadd.f32 %v2456_v33, %v3481_v6 }
 0x30d   : > { %v3590_v43 = vpop.eup %2552  ;;  %2564 = vpow2.f32 %v1429_v12  ;;  %v1267_v48 = vpop.xlane.xlu0 %1266  ;;  %2210 = vmatpush3.bf16.msra.mxu0 %v4141_v40  ;;  %v995_v12 = vadd.f32 %v3481_v6, %v994_v51  ;;  %v4145_v40 = vpack.c.bf16 %v3525_v27, %v3519_v31  ;;  %v4147_v31 = vpack.c.bf16 %v3522_v28, %v3516_v60 }
 0x30e   : > { %v1355_v7 = vsub.f32 %v3322_v19, %v1267_v48  ;;  %v1356_v24 = vsub.f32 %v3324_v25, %v1267_v48  ;;  %v1541_v22 = vadd.f32 %v3590_v43, %v3585_v26  ;;  %2211 = vmatprep.subr.bf16.mxu0 %v1770_v63  ;;  %v1772_v63 = vpack.c.bf16 %v1003_v18, %v1000_v57 }
 0x30f   : > { %v1270_v21 = vpop.xlane.xlu1 %1269  ;;  %v1771_v2 = vpack.c.bf16 %v995_v12, %v992_v59  ;;  %v4144_v48 = vmax.f32 %v3442_v30, %v3444_v35 }
 0x310   : > { %v3601_v34 = vpop.eup %2554  ;;  %v1431_v19 = vmul.f32 1.442695, %v1355_v7  ;;  %v1433_v41 = vmul.f32 1.442695, %v1356_v24  ;;  %v1357_v25 = vsub.f32 %v3326_v39, %v1270_v21  ;;  %v1358_v47 = vsub.f32 %v3330_v3, %v1270_v21  ;;  %1542 = vadd.xlane.f32.xlu0 %v1541_v22  ;;  %1323 = vmax.xlane.f32.xlu1 %v4142_v37  ;;  %v2459_v24 = vpop.f32.mrb[44].mxu0 }
 0x311   : > { %v3608_v52 = vpop.eup %2556  ;;  %v4143_v3 = vpack.c.bf16 %v3506_v49, %v3498_v53 }
 0x312   : > { %2566 = vpow2.f32 %v1431_v19  ;;  %v1435_v36 = vmul.f32 1.442695, %v1357_v25  ;;  %v1437_v11 = vmul.f32 1.442695, %v1358_v47  ;;  %v1544_v39 = vadd.f32 %v3608_v52, %v3601_v34 }
 0x313   : > { %2212 = vmatpush3.bf16.msra.mxu0 %v4143_v3  ;;  %2568 = vpow2.f32 %v1433_v41 }
 0x314   : > { %v3617_v50 = vpop.eup %2558  ;;  %2570 = vpow2.f32 %v1435_v36  ;;  %1545 = vadd.xlane.f32.xlu1 %v1544_v39  ;;  %1326 = vmax.xlane.f32.xlu0 %v4144_v48 }
 0x315   : > { %v3622_v1 = vpop.eup %2560  ;;  %2572 = vpow2.f32 %v1437_v11  ;;  %v1273_v7 = vpop.xlane.xlu0 %1272  ;;  %2213 = vmatprep.subr.bf16.mxu0 %v1771_v2 }
 0x316   : > { %v3624_v22 = vpop.eup %2562  ;;  %v1359_v49 = vsub.f32 %v3334_v9, %v1273_v7  ;;  %v1360_v53 = vsub.f32 %v3336_v10, %v1273_v7  ;;  %v1547_v54 = vadd.f32 %v3622_v1, %v3617_v50  ;;  %v4146_v9 = vmax.f32 %v3446_v38, %v3450_v15 }
 0x317   : > { %2214 = vmatpush3.bf16.msra.mxu0 %v4145_v40  ;;  %v3633_v21 = vpop.eup %2564  ;;  %v1276_v57 = vpop.xlane.xlu1 %1275 }
 0x318   : > { %2215 = vmatprep.subr.bf16.mxu0 %v1772_v63  ;;  %v1439_v59 = vmul.f32 1.442695, %v1359_v49  ;;  %v1441_v33 = vmul.f32 1.442695, %v1360_v53  ;;  %v1361_v19 = vsub.f32 %v3338_v32, %v1276_v57  ;;  %v1362_v41 = vsub.f32 %v3342_v0, %v1276_v57  ;;  %1548 = vadd.xlane.f32.xlu0 %v1547_v54  ;;  %v1007_v0 = vpop.f32.mrb[45].mxu0 }
 0x319   : > { %1329 = vmax.xlane.f32.xlu1 %v4146_v9  ;;  %v1550_v27 = vadd.f32 %v3633_v21, %v3624_v22  ;;  %v4148_v32 = vmax.f32 %v3454_v62, %v3456_v23  ;;  %v2460_v18 = vpop.f32.mrb[46].mxu0  ;;  %v1016_v63 = vadd.f32 %v2459_v24, %v3481_v6  ;;  %v1008_v2 = vadd.f32 %v3481_v6, %v1007_v0 }
 0x31a   : > { %2574 = vpow2.f32 %v1439_v59  ;;  %v1443_v10 = vmul.f32 1.442695, %v1361_v19  ;;  %v1445_v25 = vmul.f32 1.442695, %v1362_v41  ;;  %v1010_v11 = vpop.f32.mrb[47].mxu0  ;;  %v1019_v54 = vadd.f32 %v2460_v18, %v3481_v6  ;;  %v4151_v19 = vld [vmem:[#allocation30_spill] sm:$0xff] }
 0x31b   : > { %2216 = vmatpush3.bf16.msra.mxu0 %v4147_v31  ;;  %2576 = vpow2.f32 %v1441_v33  ;;  %v1011_v48 = vadd.f32 %v3481_v6, %v1010_v11  ;;  %v4156_v11 = vld [vmem:[#allocation7_spill] sm:$0xff] }
 0x31c   : > { %v3645_v47 = vpop.eup %2566  ;;  %2578 = vpow2.f32 %v1443_v10  ;;  %1332 = vmax.xlane.f32.xlu0 %v4148_v32  ;;  %v1774_v33 = vpack.c.bf16 %v1019_v54, %v1016_v63  ;;  %v4153_v10 = vpack.c.bf16 %v3543_v46, %v3537_v14  ;;  %v4155_v32 = vld [vmem:[#allocation6_spill] sm:$0xff]  ;;  %v4157_v63 = vld [vmem:[#allocation8_spill] sm:$0xff]  ;;  %v4158_v46 = vld [vmem:[#allocation31_spill] sm:$0xff] }
 0x31d   : > { %1551 = vadd.xlane.f32.xlu1 %v1550_v27  ;;  %v3650_v37 = vpop.eup %2568  ;;  %2580 = vpow2.f32 %v1445_v25  ;;  %v1279_v51 = vpop.xlane.xlu0 %1278  ;;  %v1773_v40 = vpack.c.bf16 %v1011_v48, %v1008_v2  ;;  %v4154_v27 = vld [vmem:[#allocation5_spill] sm:$0xff]  ;;  %v4159_v2 = vld [vmem:[#allocation32_spill] sm:$0xff] }
 0x31e   : > { %v3652_v12 = vpop.eup %2570  ;;  %v1363_v28 = vsub.f32 %v3346_v61, %v1279_v51  ;;  %v1364_v60 = vsub.f32 %v3348_v8, %v1279_v51  ;;  %v1553_v36 = vadd.f32 %v3650_v37, %v3645_v47  ;;  %v4149_v8 = vmax.f32 %v3458_v17, %v3462_v16 }
 0x31f   : > { %v3658_v39 = vpop.eup %2572  ;;  %v1282_v3 = vpop.xlane.xlu1 %1281  ;;  %2217 = vmatprep.subr.bf16.mxu0 %v1773_v40  ;;  %v4160_v48 = vmax.f32 %v4158_v46, %v4159_v2 }
 0x320   : > { %v1447_v7 = vmul.f32 1.442695, %v1363_v28  ;;  %v1449_v49 = vmul.f32 1.442695, %v1364_v60  ;;  %v1365_v53 = vsub.f32 %v3350_v56, %v1282_v3  ;;  %v1366_v61 = vsub.f32 %v3354_v5, %v1282_v3  ;;  %1554 = vadd.xlane.f32.xlu0 %v1553_v36  ;;  %v4150_v5 = vld [vmem:[#allocation29_spill] sm:$0xff]  ;;  %2218 = vmatpush3.bf16.msra.mxu0 %v4153_v10 }
 0x321   : > { %1335 = vmax.xlane.f32.xlu1 %v4149_v8  ;;  %v1556_v59 = vadd.f32 %v3658_v39, %v3652_v12  ;;  %v4152_v41 = vmax.f32 %v4150_v5, %v4151_v19  ;;  %2219 = vmatprep.subr.bf16.mxu0 %v1774_v33  ;;  %v4164_v33 = vld [vmem:[#allocation10_spill] sm:$0xff] }
 0x322   : > { %2582 = vpow2.f32 %v1447_v7  ;;  %v1451_v24 = vmul.f32 1.442695, %v1365_v53  ;;  %v1453_v57 = vmul.f32 1.442695, %v1366_v61  ;;  %v4161_v7 = vld [vmem:[#allocation33_spill] sm:$0xff] }
 0x323   : > { %2584 = vpow2.f32 %v1449_v49  ;;  %v4162_v49 = vpack.c.bf16 %v3540_v55, %v4161_v7 }
 0x324   : > { %v3671_v56 = vpop.eup %2574  ;;  %2586 = vpow2.f32 %v1451_v24  ;;  %1338 = vmax.xlane.f32.xlu0 %v4152_v41 }
 0x325   : > { %1557 = vadd.xlane.f32.xlu1 %v1556_v59  ;;  %v3676_v9 = vpop.eup %2576  ;;  %2588 = vpow2.f32 %v1453_v57  ;;  %v1285_v6 = vpop.xlane.xlu0 %1284  ;;  %2220 = vmatpush3.bf16.msra.mxu0 %v4162_v49  ;;  %v4163_v59 = vld [vmem:[#allocation9_spill] sm:$0xff] }
 0x326   : > { %v3681_v25 = vpop.eup %2578  ;;  %v1367_v31 = vsub.f32 %v4154_v27, %v1285_v6  ;;  %v1368_v0 = vsub.f32 %v4155_v32, %v1285_v6  ;;  %v1559_v51 = vadd.f32 %v3676_v9, %v3671_v56  ;;  %v4167_v49 = vld [vmem:[#allocation13_spill] sm:$0xff] }
 0x327   : > { %v3687_v18 = vpop.eup %2580  ;;  %v1288_v28 = vpop.xlane.xlu1 %1287 }
 0x328   : > { %v1455_v60 = vmul.f32 1.442695, %v1367_v31  ;;  %v1457_v36 = vmul.f32 1.442695, %v1368_v0  ;;  %v1369_v3 = vsub.f32 %v4156_v11, %v1288_v28  ;;  %v1370_v14 = vsub.f32 %v4157_v63, %v1288_v28  ;;  %1560 = vadd.xlane.f32.xlu0 %v1559_v51  ;;  %v4165_v0 = vld [vmem:[#allocation11_spill] sm:$0xff]  ;;  %v4166_v28 = vld [vmem:[#allocation12_spill] sm:$0xff] }
 0x329   : > { %1341 = vmax.xlane.f32.xlu1 %v4160_v48  ;;  %v1562_v8 = vadd.f32 %v3687_v18, %v3681_v25 }
 0x32a   : > { %2590 = vpow2.f32 %v1455_v60  ;;  %v1459_v53 = vmul.f32 1.442695, %v1369_v3  ;;  %v1461_v61 = vmul.f32 1.442695, %v1370_v14 }
 0x32b   : > { %2592 = vpow2.f32 %v1457_v36 }
 0x32c   : > { %v3699_v54 = vpop.eup %2582  ;;  %2594 = vpow2.f32 %v1459_v53 }
 0x32d   : > { %1563 = vadd.xlane.f32.xlu1 %v1562_v8  ;;  %v3701_v40 = vpop.eup %2584  ;;  %2596 = vpow2.f32 %v1461_v61  ;;  %v1291_v24 = vpop.xlane.xlu0 %1290  ;;  %v4168_v61 = vld [vmem:[#allocation14_spill] sm:$0xff] }
 0x32e   : > { %v3703_v57 = vpop.eup %2586  ;;  %v1371_v55 = vsub.f32 %v4163_v59, %v1291_v24  ;;  %v1372_v41 = vsub.f32 %v4164_v33, %v1291_v24  ;;  %v1565_v6 = vadd.f32 %v3701_v40, %v3699_v54 }
 0x32f   : > { %v3709_v10 = vpop.eup %2588  ;;  %v1294_v27 = vpop.xlane.xlu1 %1293 }
 0x330   : > { %v1463_v31 = vmul.f32 1.442695, %v1371_v55  ;;  %v1465_v32 = vmul.f32 1.442695, %v1372_v41  ;;  %v1373_v51 = vsub.f32 %v4165_v0, %v1294_v27  ;;  %v1374_v60 = vsub.f32 %v4166_v28, %v1294_v27  ;;  %1566 = vadd.xlane.f32.xlu0 %v1565_v6  ;;  %v4169_v6 = vld [vmem:[#allocation15_spill] sm:$0xff] }
 0x331   : > { %v1568_v36 = vadd.f32 %v3709_v10, %v3703_v57 }
 0x332   : > { %2598 = vpow2.f32 %v1463_v31  ;;  %v1467_v11 = vmul.f32 1.442695, %v1373_v51  ;;  %v1469_v3 = vmul.f32 1.442695, %v1374_v60  ;;  %v4170_v31 = vld [vmem:[#allocation16_spill] sm:$0xff] }
 0x333   : > { %2600 = vpow2.f32 %v1465_v32  ;;  %1569 = vadd.xlane.f32.xlu1 %v1568_v36 }
 0x334   : > { %v3715_v63 = vpop.eup %2590  ;;  %2602 = vpow2.f32 %v1467_v11 }
 0x335   : > { %v3717_v14 = vpop.eup %2592  ;;  %2604 = vpow2.f32 %v1469_v3  ;;  %v1297_v48 = vpop.xlane.xlu0 %1296 }
 0x336   : > { %v3719_v7 = vpop.eup %2594  ;;  %v1375_v53 = vsub.f32 %v4167_v49, %v1297_v48  ;;  %v1376_v8 = vsub.f32 %v4168_v61, %v1297_v48  ;;  %v1571_v24 = vadd.f32 %v3717_v14, %v3715_v63  ;;  %v4173_v48 = vld [vmem:[#allocation17_spill] sm:$0xff] }
 0x337   : > { %v3725_v59 = vpop.eup %2596  ;;  %v1300_v55 = vpop.xlane.xlu1 %1299 }
 0x338   : > { %v1471_v33 = vmul.f32 1.442695, %v1375_v53  ;;  %v1473_v41 = vmul.f32 1.442695, %v1376_v8  ;;  %v1377_v27 = vsub.f32 %v4169_v6, %v1300_v55  ;;  %v1378_v32 = vsub.f32 %v4170_v31, %v1300_v55  ;;  %1572 = vadd.xlane.f32.xlu0 %v1571_v24  ;;  %v4174_v53 = vld [vmem:[#allocation18_spill] sm:$0xff]  ;;  %v4176_v6 = vld [vmem:[#allocation19_spill] sm:$0xff] }
 0x339   : > { %v1574_v0 = vadd.f32 %v3725_v59, %v3719_v7  ;;  %v4177_v31 = vld [vmem:[#allocation20_spill] sm:$0xff] }
 0x33a   : > { %2606 = vpow2.f32 %v1471_v33  ;;  %v1475_v51 = vmul.f32 1.442695, %v1377_v27  ;;  %v1477_v28 = vmul.f32 1.442695, %v1378_v32 }
 0x33b   : > { %2608 = vpow2.f32 %v1473_v41  ;;  %1575 = vadd.xlane.f32.xlu1 %v1574_v0 }
 0x33c   : > { %v3731_v60 = vpop.eup %2598  ;;  %2610 = vpow2.f32 %v1475_v51 }
 0x33d   : > { %4171 = vst [vmem:[#allocation29_spill] sm:$0xff] %v3731_v60  ;;  %v3733_v36 = vpop.eup %2600  ;;  %2612 = vpow2.f32 %v1477_v28  ;;  %v1303_v11 = vpop.xlane.xlu0 %1302 }
 0x33e   : > { %v3735_v3 = vpop.eup %2602  ;;  %v1379_v49 = vsub.f32 %v4173_v48, %v1303_v11  ;;  %v1380_v61 = vsub.f32 %v4174_v53, %v1303_v11  ;;  %v1577_v8 = vadd.f32 %v3733_v36, %v3731_v60  ;;  %v4185_v60 = vld [vmem:[#allocation24_spill] sm:$0xff] }
 0x33f   : > { %4172 = vst [vmem:[#allocation30_spill] sm:$0xff] %v3735_v3  ;;  %v3741_v24 = vpop.eup %2604  ;;  %v1306_v55 = vpop.xlane.xlu1 %1305 }
 0x340   : > { %4175 = vst [vmem:[#allocation5_spill] sm:$0xff] %v3741_v24  ;;  %v1479_v33 = vmul.f32 1.442695, %v1379_v49  ;;  %v1481_v41 = vmul.f32 1.442695, %v1380_v61  ;;  %v1381_v27 = vsub.f32 %v4176_v6, %v1306_v55  ;;  %v1382_v32 = vsub.f32 %v4177_v31, %v1306_v55  ;;  %1578 = vadd.xlane.f32.xlu0 %v1577_v8  ;;  %v4181_v61 = vld [vmem:[#allocation21_spill] sm:$0xff] }
 0x341   : > { %v1580_v0 = vadd.f32 %v3741_v24, %v3735_v3  ;;  %v4182_v8 = vld [vmem:[#allocation22_spill] sm:$0xff] }
 0x342   : > { %2614 = vpow2.f32 %v1479_v33  ;;  %v1483_v51 = vmul.f32 1.442695, %v1381_v27  ;;  %v1485_v28 = vmul.f32 1.442695, %v1382_v32 }
 0x343   : > { %2616 = vpow2.f32 %v1481_v41  ;;  %1581 = vadd.xlane.f32.xlu1 %v1580_v0  ;;  %v4184_v0 = vld [vmem:[#allocation23_spill] sm:$0xff] }
 0x344   : > { %v3747_v11 = vpop.eup %2606  ;;  %2618 = vpow2.f32 %v1483_v51 }
 0x345   : > { %4178 = vst [vmem:[#allocation6_spill] sm:$0xff] %v3747_v11  ;;  %v3749_v48 = vpop.eup %2608  ;;  %2620 = vpow2.f32 %v1485_v28  ;;  %v1309_v49 = vpop.xlane.xlu0 %1308 }
 0x346   : > { %4179 = vst [vmem:[#allocation7_spill] sm:$0xff] %v3749_v48  ;;  %v3751_v53 = vpop.eup %2610  ;;  %v1383_v55 = vsub.f32 %v4181_v61, %v1309_v49  ;;  %v1384_v6 = vsub.f32 %v4182_v8, %v1309_v49  ;;  %v1583_v33 = vadd.f32 %v3749_v48, %v3747_v11  ;;  %v4188_v11 = vld [vmem:[#allocation27_spill] sm:$0xff] }
 0x347   : > { %4180 = vst [vmem:[#allocation8_spill] sm:$0xff] %v3751_v53  ;;  %v3757_v27 = vpop.eup %2612  ;;  %v1312_v41 = vpop.xlane.xlu1 %1311 }
 0x348   : > { %4183 = vst [vmem:[#allocation31_spill] sm:$0xff] %v3757_v27  ;;  %v1487_v31 = vmul.f32 1.442695, %v1383_v55  ;;  %v1489_v32 = vmul.f32 1.442695, %v1384_v6  ;;  %v1385_v51 = vsub.f32 %v4184_v0, %v1312_v41  ;;  %v1386_v3 = vsub.f32 %v4185_v60, %v1312_v41  ;;  %1584 = vadd.xlane.f32.xlu0 %v1583_v33  ;;  %v4186_v0 = vld [vmem:[#allocation25_spill] sm:$0xff] }
 0x349   : > { %v1586_v28 = vadd.f32 %v3757_v27, %v3751_v53  ;;  %v4187_v33 = vld [vmem:[#allocation26_spill] sm:$0xff]  ;;  %v4189_v53 = vld [vmem:[#allocation28_spill] sm:$0xff] }
 0x34a   : > { %2622 = vpow2.f32 %v1487_v31  ;;  %v1491_v61 = vmul.f32 1.442695, %v1385_v51  ;;  %v1493_v24 = vmul.f32 1.442695, %v1386_v3 }
 0x34b   : > { %2624 = vpow2.f32 %v1489_v32  ;;  %1587 = vadd.xlane.f32.xlu1 %v1586_v28 }
 0x34c   : > { %v3763_v49 = vpop.eup %2614  ;;  %2626 = vpow2.f32 %v1491_v61 }
 0x34d   : > { %v3765_v8 = vpop.eup %2616  ;;  %2628 = vpow2.f32 %v1493_v24  ;;  %v1315_v55 = vpop.xlane.xlu0 %1314 }
 0x34e   : > { %v3767_v6 = vpop.eup %2618  ;;  %v1387_v60 = vsub.f32 %v4186_v0, %v1315_v55  ;;  %v1388_v41 = vsub.f32 %v4187_v33, %v1315_v55  ;;  %v1589_v31 = vadd.f32 %v3765_v8, %v3763_v49 }
 0x34f   : > { %v3773_v51 = vpop.eup %2620  ;;  %v1318_v3 = vpop.xlane.xlu1 %1317 }
 0x350   : > { %v1495_v32 = vmul.f32 1.442695, %v1387_v60  ;;  %v1497_v28 = vmul.f32 1.442695, %v1388_v41  ;;  %v1389_v61 = vsub.f32 %v4188_v11, %v1318_v3  ;;  %v1390_v27 = vsub.f32 %v4189_v53, %v1318_v3  ;;  %1590 = vadd.xlane.f32.xlu0 %v1589_v31 }
 0x351   : > { %v1592_v24 = vadd.f32 %v3773_v51, %v3767_v6 }
 0x352   : > { %2630 = vpow2.f32 %v1495_v32  ;;  %v1499_v0 = vmul.f32 1.442695, %v1389_v61  ;;  %v1501_v48 = vmul.f32 1.442695, %v1390_v27 }
 0x353   : > { %2632 = vpow2.f32 %v1497_v28  ;;  %1593 = vadd.xlane.f32.xlu1 %v1592_v24 }
 0x354   : > { %v3779_v55 = vpop.eup %2622  ;;  %2634 = vpow2.f32 %v1499_v0 }
 0x355   : > { %4190 = vst [vmem:[#allocation32_spill] sm:$0xff] %v3779_v55  ;;  %v3781_v33 = vpop.eup %2624  ;;  %2636 = vpow2.f32 %v1501_v48 }
 0x356   : > { %v3783_v60 = vpop.eup %2626  ;;  %v1595_v11 = vadd.f32 %v3781_v33, %v3779_v55 }
 0x357   : > { %4191 = vst [vmem:[#allocation33_spill] sm:$0xff] %v3783_v60  ;;  %v3787_v53 = vpop.eup %2628 }
 0x358   : > { %4192 = vst [vmem:[#allocation9_spill] sm:$0xff] %v3787_v53  ;;  %1596 = vadd.xlane.f32.xlu0 %v1595_v11  ;;  %v1598_v41 = vadd.f32 %v3787_v53, %v3783_v60 }
 0x35a   : > { %1599 = vadd.xlane.f32.xlu1 %v1598_v41 }
 0x35c   : > { %v3791_v27 = vpop.eup %2630 }
 0x35d   : > { %4193 = vst [vmem:[#allocation10_spill] sm:$0xff] %v3791_v27  ;;  %v3793_v31 = vpop.eup %2632 }
 0x35e   : > { %4194 = vst [vmem:[#allocation11_spill] sm:$0xff] %v3793_v31  ;;  %v3795_v3 = vpop.eup %2634  ;;  %v1601_v48 = vadd.f32 %v3793_v31, %v3791_v27 }
 0x35f   : > { %4195 = vst [vmem:[#allocation12_spill] sm:$0xff] %v3795_v3  ;;  %v3799_v32 = vpop.eup %2636 }
 0x360   : > { %4196 = vst [vmem:[#allocation13_spill] sm:$0xff] %v3799_v32  ;;  %1602 = vadd.xlane.f32.xlu0 %v1601_v48  ;;  %v1604_v28 = vadd.f32 %v3799_v32, %v3795_v3 }
 0x362   : > { %1605 = vadd.xlane.f32.xlu1 %v1604_v28 }
 0x395   : > { %v1537_v61 = vpop.xlane.xlu0 %1536 }
 0x396   : > { %2638 = vrcp.f32 %v1537_v61 }
 0x399   : > { %v1540_v24 = vpop.xlane.xlu1 %1539  ;;  %v1321_v0 = vpop.xlane.xlu0 %1320 }
 0x39a   : > { %2640 = vrcp.f32 %v1540_v24  ;;  %v1391_v11 = vsub.f32 %v3430_v44, %v1321_v0  ;;  %v1392_v41 = vsub.f32 %v3432_v45, %v1321_v0 }
 0x39c   : > { %v1503_v55 = vmul.f32 1.442695, %v1391_v11  ;;  %v1505_v60 = vmul.f32 1.442695, %v1392_v41 }
 0x39d   : > { %v1543_v53 = vpop.xlane.xlu0 %1542  ;;  %v1324_v27 = vpop.xlane.xlu1 %1323 }
 0x39e   : > { %2642 = vpow2.f32 %v1503_v55  ;;  %v1393_v48 = vsub.f32 %v3434_v58, %v1324_v27  ;;  %v1394_v31 = vsub.f32 %v3438_v13, %v1324_v27 }
 0x39f   : > { %2644 = vpow2.f32 %v1505_v60 }
 0x3a0   : > { %2646 = vrcp.f32 %v1543_v53  ;;  %v1507_v28 = vmul.f32 1.442695, %v1393_v48  ;;  %v1509_v61 = vmul.f32 1.442695, %v1394_v31  ;;  %v2639_v24 = vpop.eup %2638 }
 0x3a1   : > { %v1546_v3 = vpop.xlane.xlu1 %1545  ;;  %v1327_v32 = vpop.xlane.xlu0 %1326  ;;  %v1663_v58 = vmul.f32 %v2639_v24, %v3559_v4  ;;  %v1664_v27 = vmul.f32 %v2639_v24, %v3561_v20 }
 0x3a2   : > { %2648 = vpow2.f32 %v1507_v28  ;;  %v1395_v44 = vsub.f32 %v3442_v30, %v1327_v32  ;;  %v1396_v45 = vsub.f32 %v3444_v35, %v1327_v32 }
 0x3a3   : > { %2650 = vpow2.f32 %v1509_v61 }
 0x3a4   : > { %v2641_v0 = vpop.eup %2640  ;;  %2652 = vrcp.f32 %v1546_v3  ;;  %v1511_v55 = vmul.f32 1.442695, %v1395_v44  ;;  %v1513_v11 = vmul.f32 1.442695, %v1396_v45 }
 0x3a5   : > { %v1665_v13 = vmul.f32 %v2641_v0, %v3572_v29  ;;  %v1549_v60 = vpop.xlane.xlu0 %1548  ;;  %v1666_v31 = vmul.f32 %v2641_v0, %v3576_v42 }
 0x3a6   : > { %v1330_v53 = vpop.xlane.xlu1 %1329  ;;  %2654 = vpow2.f32 %v1511_v55 }
 0x3a7   : > { %v1397_v30 = vsub.f32 %v3446_v38, %v1330_v53  ;;  %v1398_v35 = vsub.f32 %v3450_v15, %v1330_v53  ;;  %2656 = vpow2.f32 %v1513_v11  ;;  %v1728_v32 = vpack.c.bf16 %v1666_v31, %v1664_v27 }
 0x3a8   : > { %v1727_v3 = vpack.c.bf16 %v1665_v13, %v1663_v58  ;;  %v3815_v41 = vpop.eup %2642  ;;  %2658 = vrcp.f32 %v1549_v60 }
 0x3a9   : > { %v1515_v4 = vmul.f32 1.442695, %v1397_v30  ;;  %v1517_v48 = vmul.f32 1.442695, %v1398_v35  ;;  %v3817_v29 = vpop.eup %2644  ;;  %1807 = vmatprep.mubr.bf16.mxu0 %v1728_v32  ;;  %v1333_v20 = vpop.xlane.xlu0 %1332 }
 0x3aa   : > { %v1552_v28 = vpop.xlane.xlu1 %1551  ;;  %v2647_v61 = vpop.eup %2646  ;;  %v1399_v42 = vsub.f32 %v3454_v62, %v1333_v20  ;;  %v1400_v38 = vsub.f32 %v3456_v23, %v1333_v20  ;;  %1808 = vmatmul.mubr.bf16.vlgmr.msra.gmra.mrb[48].mxu0 %v1727_v3  ;;  %v1607_v15 = vadd.f32 %v3817_v29, %v3815_v41 }
 0x3ab   : > { %2660 = vpow2.f32 %v1515_v4  ;;  %v1668_v58 = vmul.f32 %v2647_v61, %v3590_v43  ;;  %v1667_v27 = vmul.f32 %v2647_v61, %v3585_v26 }
 0x3ac   : > { %2662 = vpow2.f32 %v1517_v48  ;;  %v3823_v24 = vpop.eup %2648  ;;  %v1519_v44 = vmul.f32 1.442695, %v1399_v42  ;;  %v1521_v45 = vmul.f32 1.442695, %v1400_v38  ;;  %1608 = vadd.xlane.f32.xlu0 %v1607_v15 }
 0x3ad   : > { %2664 = vrcp.f32 %v1552_v28  ;;  %v3825_v0 = vpop.eup %2650  ;;  %v1555_v55 = vpop.xlane.xlu0 %1554 }
 0x3ae   : > { %v1336_v11 = vpop.xlane.xlu1 %1335  ;;  %v2653_v62 = vpop.eup %2652  ;;  %2666 = vpow2.f32 %v1519_v44  ;;  %v1610_v60 = vadd.f32 %v3825_v0, %v3823_v24 }
 0x3af   : > { %v1401_v23 = vsub.f32 %v3458_v17, %v1336_v11  ;;  %v1402_v13 = vsub.f32 %v3462_v16, %v1336_v11  ;;  %2668 = vpow2.f32 %v1521_v45  ;;  %v1670_v53 = vmul.f32 %v2653_v62, %v3608_v52 }
 0x3b0   : > { %v1669_v31 = vmul.f32 %v2653_v62, %v3601_v34  ;;  %v3835_v30 = vpop.eup %2654  ;;  %1611 = vadd.xlane.f32.xlu1 %v1610_v60  ;;  %2670 = vrcp.f32 %v1555_v55 }
 0x3b1   : > { %v1523_v35 = vmul.f32 1.442695, %v1401_v23  ;;  %v1525_v43 = vmul.f32 1.442695, %v1402_v13  ;;  %v3837_v32 = vpop.eup %2656  ;;  %v1730_v17 = vpack.c.bf16 %v1670_v53, %v1668_v58  ;;  %v1339_v3 = vpop.xlane.xlu0 %1338 }
 0x3b2   : > { %v1558_v16 = vpop.xlane.xlu1 %1557  ;;  %v1729_v4 = vpack.c.bf16 %v1669_v31, %v1667_v27  ;;  %v2659_v48 = vpop.eup %2658  ;;  %v1403_v52 = vsub.f32 %v4150_v5, %v1339_v3  ;;  %v1404_v26 = vsub.f32 %v4151_v19, %v1339_v3  ;;  %v1613_v34 = vadd.f32 %v3837_v32, %v3835_v30 }
 0x3b3   : > { %2672 = vpow2.f32 %v1523_v35  ;;  %1815 = vmatprep.mubr.bf16.mxu0 %v1730_v17  ;;  %v1672_v15 = vmul.f32 %v2659_v48, %v3622_v1  ;;  %v1671_v58 = vmul.f32 %v2659_v48, %v3617_v50 }
 0x3b4   : > { %2674 = vpow2.f32 %v1525_v43  ;;  %v1527_v20 = vmul.f32 1.442695, %v1403_v52  ;;  %v1529_v61 = vmul.f32 1.442695, %v1404_v26  ;;  %1816 = vmatmul.mubr.bf16.gmra.mrb[52].mxu0 %v1729_v4  ;;  %1614 = vadd.xlane.f32.xlu0 %v1613_v34 }
 0x3b5   : > { %v3843_v28 = vpop.eup %2660  ;;  %2676 = vrcp.f32 %v1558_v16  ;;  %v1561_v19 = vpop.xlane.xlu0 %1560 }
 0x3b6   : > { %v3845_v42 = vpop.eup %2662  ;;  %v1342_v38 = vpop.xlane.xlu1 %1341  ;;  %2678 = vpow2.f32 %v1527_v20 }
 0x3b7   : > { %v2665_v5 = vpop.eup %2664  ;;  %v1405_v44 = vsub.f32 %v4158_v46, %v1342_v38  ;;  %v1406_v45 = vsub.f32 %v4159_v2, %v1342_v38  ;;  %v1616_v55 = vadd.f32 %v3845_v42, %v3843_v28  ;;  %2680 = vpow2.f32 %v1529_v61 }
 0x3b8   : > { %v1674_v11 = vmul.f32 %v2665_v5, %v3633_v21  ;;  %v1673_v62 = vmul.f32 %v2665_v5, %v3624_v22  ;;  %v3855_v23 = vpop.eup %2666  ;;  %2682 = vrcp.f32 %v1561_v19 }
 0x3b9   : > { %v1531_v1 = vmul.f32 1.442695, %v1405_v44  ;;  %v1533_v13 = vmul.f32 1.442695, %v1406_v45  ;;  %1617 = vadd.xlane.f32.xlu1 %v1616_v55  ;;  %v3857_v60 = vpop.eup %2668 }
 0x3ba   : > { %v1732_v46 = vpack.c.bf16 %v1674_v11, %v1672_v15  ;;  %v1564_v2 = vpop.xlane.xlu1 %1563  ;;  %v1731_v53 = vpack.c.bf16 %v1673_v62, %v1671_v58  ;;  %v1619_v27 = vadd.f32 %v3857_v60, %v3855_v23  ;;  %v2671_v21 = vpop.eup %2670 }
 0x3bb   : > { %2684 = vpow2.f32 %v1531_v1  ;;  %v1676_v17 = vmul.f32 %v2671_v21, %v3650_v37  ;;  %v1675_v3 = vmul.f32 %v2671_v21, %v3645_v47 }
 0x3bc   : > { %2686 = vpow2.f32 %v1533_v13  ;;  %1823 = vmatprep.mubr.bf16.mxu0 %v1732_v46  ;;  %1620 = vadd.xlane.f32.xlu0 %v1619_v27 }
 0x3bd   : > { %v3861_v50 = vpop.eup %2672  ;;  %2688 = vrcp.f32 %v1564_v2  ;;  %1824 = vmatmul.mubr.bf16.gmra.mrb[56].mxu0 %v1731_v53  ;;  %v1567_v31 = vpop.xlane.xlu0 %1566 }
 0x3be   : > { %v3863_v22 = vpop.eup %2674  ;;  %2690 = vrcp.f32 %v1567_v31 }
 0x3bf   : > { %v2677_v35 = vpop.eup %2676  ;;  %v1622_v43 = vadd.f32 %v3863_v22, %v3861_v50 }
 0x3c0   : > { %v1678_v16 = vmul.f32 %v2677_v35, %v3658_v39  ;;  %v1677_v4 = vmul.f32 %v2677_v35, %v3652_v12  ;;  %v3871_v48 = vpop.eup %2678  ;;  %v1570_v52 = vpop.xlane.xlu1 %1569 }
 0x3c1   : > { %1623 = vadd.xlane.f32.xlu1 %v1622_v43  ;;  %v3873_v26 = vpop.eup %2680  ;;  %2692 = vrcp.f32 %v1570_v52  ;;  %v4197_v52 = vld [vmem:[#allocation5_spill] sm:$0xff] }
 0x3c2   : > { %v1734_v34 = vpack.c.bf16 %v1678_v16, %v1676_v17  ;;  %v1733_v20 = vpack.c.bf16 %v1677_v4, %v1675_v3  ;;  %v1625_v61 = vadd.f32 %v3873_v26, %v3871_v48  ;;  %v2683_v37 = vpop.eup %2682 }
 0x3c3   : > { %v1680_v5 = vmul.f32 %v2683_v37, %v3676_v9  ;;  %v1679_v44 = vmul.f32 %v2683_v37, %v3671_v56  ;;  %v4199_v37 = vld [vmem:[#allocation29_spill] sm:$0xff] }
 0x3c4   : > { %1831 = vmatprep.mubr.bf16.mxu0 %v1734_v34  ;;  %1626 = vadd.xlane.f32.xlu0 %v1625_v61 }
 0x3c5   : > { %v3877_v38 = vpop.eup %2684  ;;  %1832 = vmatmul.mubr.bf16.gmra.mrb[60].mxu0 %v1733_v20  ;;  %v1573_v12 = vpop.xlane.xlu0 %1572  ;;  %v4198_v20 = vld [vmem:[#allocation30_spill] sm:$0xff] }
 0x3c6   : > { %v3879_v47 = vpop.eup %2686  ;;  %2694 = vrcp.f32 %v1573_v12 }
 0x3c7   : > { %v2689_v39 = vpop.eup %2688  ;;  %v1628_v15 = vadd.f32 %v3879_v47, %v3877_v38 }
 0x3c8   : > { %v1682_v19 = vmul.f32 %v2689_v39, %v3687_v18  ;;  %v1681_v45 = vmul.f32 %v2689_v39, %v3681_v25  ;;  %v1576_v55 = vpop.xlane.xlu1 %1575  ;;  %v2691_v11 = vpop.eup %2690 }
 0x3c9   : > { %1629 = vadd.xlane.f32.xlu1 %v1628_v15  ;;  %2696 = vrcp.f32 %v1576_v55  ;;  %v1684_v13 = vmul.f32 %v2691_v11, %v3701_v40  ;;  %v1683_v25 = vmul.f32 %v2691_v11, %v3699_v54  ;;  %v4202_v11 = vld [vmem:[#allocation8_spill] sm:$0xff] }
 0x3ca   : > { %v1736_v58 = vpack.c.bf16 %v1682_v19, %v1680_v5  ;;  %v1735_v62 = vpack.c.bf16 %v1681_v45, %v1679_v44  ;;  %v4200_v5 = vld [vmem:[#allocation7_spill] sm:$0xff] }
 0x3cb   : > { %v2693_v1 = vpop.eup %2692  ;;  %v4201_v44 = vld [vmem:[#allocation31_spill] sm:$0xff] }
 0x3cc   : > { %1839 = vmatprep.mubr.bf16.mxu0 %v1736_v58  ;;  %v1686_v9 = vmul.f32 %v2693_v1, %v3709_v10  ;;  %v1685_v18 = vmul.f32 %v2693_v1, %v3703_v57  ;;  %v4203_v1 = vld [vmem:[#allocation6_spill] sm:$0xff] }
 0x3cd   : > { %1840 = vmatmul.mubr.bf16.gmra.mrb[64].mxu0 %v1735_v62  ;;  %v1579_v46 = vpop.xlane.xlu0 %1578 }
 0x3ce   : > { %v1738_v2 = vpack.c.bf16 %v1686_v9, %v1684_v13  ;;  %2698 = vrcp.f32 %v1579_v46  ;;  %v1737_v27 = vpack.c.bf16 %v1685_v18, %v1683_v25 }
 0x3d0   : > { %1847 = vmatprep.mubr.bf16.mxu0 %v1738_v2  ;;  %v1582_v56 = vpop.xlane.xlu1 %1581  ;;  %v2695_v53 = vpop.eup %2694 }
 0x3d1   : > { %2700 = vrcp.f32 %v1582_v56  ;;  %v1688_v31 = vmul.f32 %v2695_v53, %v3717_v14  ;;  %v1687_v17 = vmul.f32 %v2695_v53, %v3715_v63 }
 0x3d3   : > { %v2697_v21 = vpop.eup %2696 }
 0x3d4   : > { %v1690_v40 = vmul.f32 %v2697_v21, %v3725_v59  ;;  %v1689_v43 = vmul.f32 %v2697_v21, %v3719_v7 }
 0x3d5   : > { %1848 = vmatmul.mubr.bf16.gmra.mrb[68].mxu0 %v1737_v27  ;;  %v1585_v35 = vpop.xlane.xlu0 %1584 }
 0x3d6   : > { %v1740_v10 = vpack.c.bf16 %v1690_v40, %v1688_v31  ;;  %2702 = vrcp.f32 %v1585_v35  ;;  %v1739_v54 = vpack.c.bf16 %v1689_v43, %v1687_v17 }
 0x3d8   : > { %1855 = vmatprep.mubr.bf16.mxu0 %v1740_v10  ;;  %v1588_v57 = vpop.xlane.xlu1 %1587  ;;  %v2699_v16 = vpop.eup %2698 }
 0x3d9   : > { %2704 = vrcp.f32 %v1588_v57  ;;  %v1692_v4 = vmul.f32 %v2699_v16, %v3733_v36  ;;  %v1691_v12 = vmul.f32 %v2699_v16, %v4199_v37  ;;  %v4204_v57 = vld [vmem:[#allocation9_spill] sm:$0xff] }
 0x3db   : > { %v2701_v3 = vpop.eup %2700 }
 0x3dc   : > { %v1694_v14 = vmul.f32 %v2701_v3, %v4197_v52  ;;  %v1693_v61 = vmul.f32 %v2701_v3, %v4198_v20  ;;  %v4206_v3 = vld [vmem:[#allocation32_spill] sm:$0xff] }
 0x3dd   : > { %1856 = vmatmul.mubr.bf16.gmra.mrb[72].mxu0 %v1739_v54  ;;  %v1591_v34 = vpop.xlane.xlu0 %1590 }
 0x3de   : > { %v1742_v59 = vpack.c.bf16 %v1694_v14, %v1692_v4  ;;  %2706 = vrcp.f32 %v1591_v34  ;;  %v1741_v63 = vpack.c.bf16 %v1693_v61, %v1691_v12  ;;  %v4207_v14 = vld [vmem:[#allocation11_spill] sm:$0xff]  ;;  %v4209_v61 = vld [vmem:[#allocation12_spill] sm:$0xff] }
 0x3e0   : > { %1863 = vmatprep.mubr.bf16.mxu0 %v1742_v59  ;;  %v1594_v7 = vpop.xlane.xlu1 %1593  ;;  %v2703_v39 = vpop.eup %2702  ;;  %v4208_v59 = vld [vmem:[#allocation13_spill] sm:$0xff] }
 0x3e1   : > { %2708 = vrcp.f32 %v1594_v7  ;;  %v1696_v19 = vmul.f32 %v2703_v39, %v4200_v5  ;;  %v1695_v13 = vmul.f32 %v2703_v39, %v4203_v1  ;;  %v4210_v7 = vld [vmem:[#allocation10_spill] sm:$0xff] }
 0x3e3   : > { %v2705_v15 = vpop.eup %2704 }
 0x3e4   : > { %v1698_v36 = vmul.f32 %v2705_v15, %v4201_v44  ;;  %v1697_v58 = vmul.f32 %v2705_v15, %v4202_v11 }
 0x3e5   : > { %1864 = vmatmul.mubr.bf16.gmra.mrb[76].mxu0 %v1741_v63  ;;  %v1597_v45 = vpop.xlane.xlu0 %1596 }
 0x3e6   : > { %2710 = vrcp.f32 %v1597_v45  ;;  %v1744_v55 = vpack.c.bf16 %v1698_v36, %v1696_v19  ;;  %v1743_v46 = vpack.c.bf16 %v1697_v58, %v1695_v13 }
 0x3e7   : > { %v1600_v62 = vpop.xlane.xlu1 %1599 }
 0x3e8   : > { %1871 = vmatprep.mubr.bf16.mxu0 %v1744_v55  ;;  %2712 = vrcp.f32 %v1600_v62  ;;  %v2707_v9 = vpop.eup %2706 }
 0x3e9   : > { %v1700_v18 = vmul.f32 %v2707_v9, %v3765_v8  ;;  %v1699_v40 = vmul.f32 %v2707_v9, %v3763_v49 }
 0x3eb   : > { %v2709_v2 = vpop.eup %2708 }
 0x3ec   : > { %v1702_v56 = vmul.f32 %v2709_v2, %v3773_v51  ;;  %v1701_v27 = vmul.f32 %v2709_v2, %v3767_v6  ;;  %v4205_v51 = vld [vmem:[#allocation33_spill] sm:$0xff] }
 0x3ed   : > { %1872 = vmatmul.mubr.bf16.gmra.mrb[80].mxu0 %v1743_v46  ;;  %v1603_v25 = vpop.xlane.xlu0 %1602 }
 0x3ee   : > { %2714 = vrcp.f32 %v1603_v25  ;;  %v1746_v53 = vpack.c.bf16 %v1702_v56, %v1700_v18  ;;  %v1745_v10 = vpack.c.bf16 %v1701_v27, %v1699_v40 }
 0x3ef   : > { %v1606_v21 = vpop.xlane.xlu1 %1605 }
 0x3f0   : > { %v2711_v31 = vpop.eup %2710  ;;  %1879 = vmatprep.mubr.bf16.mxu0 %v1746_v53  ;;  %2716 = vrcp.f32 %v1606_v21 }
 0x3f1   : > { %v1704_v43 = vmul.f32 %v2711_v31, %v3781_v33  ;;  %v1703_v6 = vmul.f32 %v2711_v31, %v4206_v3 }
 0x3f2   : > { %v2713_v35 = vpop.eup %2712 }
 0x3f3   : > { %v1706_v17 = vmul.f32 %v2713_v35, %v4204_v57  ;;  %v1705_v16 = vmul.f32 %v2713_v35, %v4205_v51 }
 0x3f5   : > { %1880 = vmatmul.mubr.bf16.gmra.mrb[84].mxu0 %v1745_v10  ;;  %v1748_v8 = vpack.c.bf16 %v1706_v17, %v1704_v43  ;;  %v1747_v52 = vpack.c.bf16 %v1705_v16, %v1703_v6  ;;  %v2734_v16 = vld [vmem:[%s2935_s23] sm:$0xff] }
 0x3f7   : > { %1887 = vmatprep.mubr.bf16.mxu0 %v1748_v8 }
 0x3f8   : > { %v2715_v54 = vpop.eup %2714 }
 0x3f9   : > { %v1708_v34 = vmul.f32 %v2715_v54, %v4207_v14  ;;  %v1707_v37 = vmul.f32 %v2715_v54, %v4210_v7 }
 0x3fa   : > { %v2717_v4 = vpop.eup %2716 }
 0x3fb   : > { %v1710_v49 = vmul.f32 %v2717_v4, %v4208_v59  ;;  %v1709_v33 = vmul.f32 %v2717_v4, %v4209_v61 }
 0x3fd   : > { %1888 = vmatmul.mubr.bf16.gmra.mrb[88].mxu0 %v1747_v52  ;;  %v1750_v20 = vpack.c.bf16 %v1710_v49, %v1708_v34  ;;  %v1749_v12 = vpack.c.bf16 %v1709_v33, %v1707_v37  ;;  %v2736_v34 = vld [vmem:[%s2935_s23 + $0x10] sm:$0xff] }
 0x3ff   : > { %1895 = vmatprep.mubr.bf16.mxu0 %v1750_v20  ;;  %v2737_v20 = vld [vmem:[%s2935_s23 + $0x18] sm:$0xff] }
 0x405   : > { %1896 = vmatmul.mubr.bf16.gmra.mrb[92].mxu0 %v1749_v12 }
 0x439   : > { %v1609_v39 = vpop.xlane.xlu0 %1608 }
 0x43a   : > { %2718 = vrcp.f32 %v1609_v39 }
 0x43d   : > { %v1612_v63 = vpop.xlane.xlu1 %1611 }
 0x43e   : > { %2720 = vrcp.f32 %v1612_v63  ;;  %v2738_v63 = vld [vmem:[%s2935_s23 + $0x20] sm:$0xff] }
 0x441   : > { %v1615_v15 = vpop.xlane.xlu0 %1614 }
 0x442   : > { %2722 = vrcp.f32 %v1615_v15 }
 0x444   : > { %v2719_v19 = vpop.eup %2718 }
 0x445   : > { %v1712_v45 = vmul.f32 %v2719_v19, %v3817_v29  ;;  %v1711_v11 = vmul.f32 %v2719_v19, %v3815_v41  ;;  %v2739_v19 = vld [vmem:[%s2935_s23 + $0x28] sm:$0xff] }
 0x446   : > { %v1618_v5 = vpop.xlane.xlu1 %1617 }
 0x447   : > { %2724 = vrcp.f32 %v1618_v5 }
 0x448   : > { %v2721_v44 = vpop.eup %2720 }
 0x449   : > { %v1621_v36 = vpop.xlane.xlu0 %1620  ;;  %v1714_v55 = vmul.f32 %v2721_v44, %v3825_v0  ;;  %v1713_v58 = vmul.f32 %v2721_v44, %v3823_v24 }
 0x44a   : > { %2726 = vrcp.f32 %v1621_v36 }
 0x44b   : > { %v1752_v62 = vpack.c.bf16 %v1714_v55, %v1712_v45  ;;  %v1751_v1 = vpack.c.bf16 %v1713_v58, %v1711_v11 }
 0x44c   : > { %v2723_v9 = vpop.eup %2722 }
 0x44d   : > { %1903 = vmatprep.mubr.bf16.mxu0 %v1752_v62  ;;  %v1716_v18 = vmul.f32 %v2723_v9, %v3837_v32  ;;  %v1715_v0 = vmul.f32 %v2723_v9, %v3835_v30  ;;  %v2740_v62 = vld [vmem:[%s2935_s23 + $0x30] sm:$0xff]  ;;  %v2741_v9 = vld [vmem:[%s2935_s23 + $0x38] sm:$0xff] }
 0x44e   : > { %v1624_v13 = vpop.xlane.xlu1 %1623  ;;  %1904 = vmatmul.mubr.bf16.gmra.mrb[96].mxu0 %v1751_v1 }
 0x44f   : > { %2728 = vrcp.f32 %v1624_v13 }
 0x451   : > { %v2725_v46 = vpop.eup %2724  ;;  %v1627_v2 = vpop.xlane.xlu0 %1626 }
 0x452   : > { %v1718_v29 = vmul.f32 %v2725_v46, %v3845_v42  ;;  %v1717_v41 = vmul.f32 %v2725_v46, %v3843_v28  ;;  %2730 = vrcp.f32 %v1627_v2 }
 0x454   : > { %v1754_v56 = vpack.c.bf16 %v1718_v29, %v1716_v18  ;;  %v1753_v24 = vpack.c.bf16 %v1717_v41, %v1715_v0  ;;  %v2727_v53 = vpop.eup %2726 }
 0x455   : > { %v1720_v21 = vmul.f32 %v2727_v53, %v3857_v60  ;;  %v1719_v32 = vmul.f32 %v2727_v53, %v3855_v23  ;;  %v2743_v53 = vld [vmem:[%s2935_s23 + $0x48] sm:$0xff] }
 0x456   : > { %1911 = vmatprep.mubr.bf16.mxu0 %v1754_v56  ;;  %v1630_v25 = vpop.xlane.xlu1 %1629  ;;  %v2742_v56 = vld [vmem:[%s2935_s23 + $0x40] sm:$0xff] }
 0x457   : > { %2732 = vrcp.f32 %v1630_v25  ;;  %1912 = vmatmul.mubr.bf16.gmra.mrb[100].mxu0 %v1753_v24 }
 0x459   : > { %v2729_v27 = vpop.eup %2728 }
 0x45a   : > { %v1722_v31 = vmul.f32 %v2729_v27, %v3863_v22  ;;  %v1721_v30 = vmul.f32 %v2729_v27, %v3861_v50 }
 0x45c   : > { %v1756_v42 = vpack.c.bf16 %v1722_v31, %v1720_v21  ;;  %v1755_v28 = vpack.c.bf16 %v1721_v30, %v1719_v32  ;;  %v2731_v40 = vpop.eup %2730 }
 0x45d   : > { %v1724_v10 = vmul.f32 %v2731_v40, %v3873_v26  ;;  %v1723_v60 = vmul.f32 %v2731_v40, %v3871_v48 }
 0x45e   : > { %1919 = vmatprep.mubr.bf16.mxu0 %v1756_v42 }
 0x45f   : > { %1920 = vmatmul.mubr.bf16.gmra.mrb[104].mxu0 %v1755_v28  ;;  %v2744_v28 = vld [vmem:[%s2935_s23 + $0x50] sm:$0xff] }
 0x461   : > { %v2733_v35 = vpop.eup %2732 }
 0x462   : > { %v1726_v43 = vmul.f32 %v2733_v35, %v3879_v47  ;;  %v1725_v22 = vmul.f32 %v2733_v35, %v3877_v38  ;;  %v2735_v38 = vld [vmem:[%s2935_s23 + $0x8] sm:$0xff] }
 0x464   : > { %v1758_v23 = vpack.c.bf16 %v1726_v43, %v1724_v10  ;;  %v1757_v57 = vpack.c.bf16 %v1725_v22, %v1723_v60  ;;  %v2745_v10 = vld [vmem:[%s2935_s23 + $0x58] sm:$0xff] }
 0x466   : > { %1927 = vmatprep.mubr.bf16.mxu0 %v1758_v23 }
 0x467   : > { %1928 = vmatmul.mubr.bf16.gmra.mrb[108].mxu0 %v1757_v57 }
 0x47d   : > { %v2221_v50 = vpop.f32.mrb[48].mxu0 }
 0x47e   : > { %v2222_v17 = vpop.f32.mrb[49].mxu0 }
 0x47f   : > { %v2223_v8 = vadd.f32 %v2222_v17, %v2221_v50  ;;  %v2224_v51 = vpop.f32.mrb[50].mxu0  ;;  %v2746_v17 = vld [vmem:[%s2935_s23 + $0x60] sm:$0xff] }
 0x480   : > { %v2225_v26 = vpop.f32.mrb[51].mxu0 }
 0x481   : > { %v1810_v47 = vadd.f32 %v2734_v16, %v2223_v8  ;;  %v2226_v48 = vadd.f32 %v2225_v26, %v2224_v51  ;;  %v2747_v26 = vld [vmem:[%s2935_s23 + $0x68] sm:$0xff] }
 0x483   : > { %1936 = vst [vmem:[%s3935_s21] sm:$0xff] %v1810_v47  ;;  %v1813_v54 = vadd.f32 %v2735_v38, %v2226_v48 }
 0x485   : > { %1937 = vst [vmem:[%s3935_s21 + $0x8] sm:$0xff] %v1813_v54 }
 0x487   : > { %v2227_v3 = vpop.f32.mrb[52].mxu0 }
 0x488   : > { %v2228_v6 = vpop.f32.mrb[53].mxu0 }
 0x489   : > { %v2229_v4 = vadd.f32 %v2228_v6, %v2227_v3  ;;  %v2230_v52 = vpop.f32.mrb[54].mxu0  ;;  %v2748_v6 = vld [vmem:[%s2935_s23 + $0x70] sm:$0xff] }
 0x48a   : > { %v2231_v14 = vpop.f32.mrb[55].mxu0 }
 0x48b   : > { %v1818_v59 = vadd.f32 %v2736_v34, %v2229_v4  ;;  %v2232_v49 = vadd.f32 %v2231_v14, %v2230_v52  ;;  %v2749_v14 = vld [vmem:[%s2935_s23 + $0x78] sm:$0xff] }
 0x48d   : > { %1938 = vst [vmem:[%s3935_s21 + $0x10] sm:$0xff] %v1818_v59  ;;  %v1821_v61 = vadd.f32 %v2737_v20, %v2232_v49 }
 0x48f   : > { %1939 = vst [vmem:[%s3935_s21 + $0x18] sm:$0xff] %v1821_v61 }
 0x490   : > { %v2233_v33 = vpop.f32.mrb[56].mxu0 }
 0x491   : > { %v2234_v7 = vpop.f32.mrb[57].mxu0 }
 0x492   : > { %v2235_v37 = vadd.f32 %v2234_v7, %v2233_v33  ;;  %v2236_v12 = vpop.f32.mrb[58].mxu0  ;;  %v2750_v7 = vld [vmem:[%s2935_s23 + $0x80] sm:$0xff] }
 0x493   : > { %v2237_v39 = vpop.f32.mrb[59].mxu0 }
 0x494   : > { %v1826_v15 = vadd.f32 %v2738_v63, %v2235_v37  ;;  %v2238_v5 = vadd.f32 %v2237_v39, %v2236_v12  ;;  %v2751_v39 = vld [vmem:[%s2935_s23 + $0x88] sm:$0xff] }
 0x496   : > { %1940 = vst [vmem:[%s3935_s21 + $0x20] sm:$0xff] %v1826_v15  ;;  %v1829_v44 = vadd.f32 %v2739_v19, %v2238_v5 }
 0x498   : > { %1941 = vst [vmem:[%s3935_s21 + $0x28] sm:$0xff] %v1829_v44  ;;  %v2239_v36 = vpop.f32.mrb[60].mxu0 }
 0x499   : > { %v2240_v45 = vpop.f32.mrb[61].mxu0 }
 0x49a   : > { %v2241_v55 = vadd.f32 %v2240_v45, %v2239_v36  ;;  %v2242_v11 = vpop.f32.mrb[62].mxu0  ;;  %v2752_v45 = vld [vmem:[%s2935_s23 + $0x90] sm:$0xff] }
 0x49b   : > { %v2243_v58 = vpop.f32.mrb[63].mxu0 }
 0x49c   : > { %v1834_v1 = vadd.f32 %v2740_v62, %v2241_v55  ;;  %v2244_v13 = vadd.f32 %v2243_v58, %v2242_v11  ;;  %v2753_v58 = vld [vmem:[%s2935_s23 + $0x98] sm:$0xff] }
 0x49e   : > { %1942 = vst [vmem:[%s3935_s21 + $0x30] sm:$0xff] %v1834_v1  ;;  %v1837_v46 = vadd.f32 %v2741_v9, %v2244_v13 }
 0x4a0   : > { %1943 = vst [vmem:[%s3935_s21 + $0x38] sm:$0xff] %v1837_v46  ;;  %v2245_v2 = vpop.f32.mrb[64].mxu0 }
 0x4a1   : > { %v2246_v18 = vpop.f32.mrb[65].mxu0 }
 0x4a2   : > { %v2247_v29 = vadd.f32 %v2246_v18, %v2245_v2  ;;  %v2248_v0 = vpop.f32.mrb[66].mxu0  ;;  %v2754_v18 = vld [vmem:[%s2935_s23 + $0xa0] sm:$0xff] }
 0x4a3   : > { %v2249_v41 = vpop.f32.mrb[67].mxu0 }
 0x4a4   : > { %v1842_v24 = vadd.f32 %v2742_v56, %v2247_v29  ;;  %v2250_v25 = vadd.f32 %v2249_v41, %v2248_v0  ;;  %v2755_v41 = vld [vmem:[%s2935_s23 + $0xa8] sm:$0xff] }
 0x4a6   : > { %1944 = vst [vmem:[%s3935_s21 + $0x40] sm:$0xff] %v1842_v24  ;;  %v1845_v27 = vadd.f32 %v2743_v53, %v2250_v25 }
 0x4a8   : > { %1945 = vst [vmem:[%s3935_s21 + $0x48] sm:$0xff] %v1845_v27  ;;  %v2251_v21 = vpop.f32.mrb[68].mxu0 }
 0x4a9   : > { %v2252_v31 = vpop.f32.mrb[69].mxu0 }
 0x4aa   : > { %v2253_v32 = vadd.f32 %v2252_v31, %v2251_v21  ;;  %v2254_v30 = vpop.f32.mrb[70].mxu0  ;;  %v2756_v31 = vld [vmem:[%s2935_s23 + $0xb0] sm:$0xff] }
 0x4ab   : > { %v2255_v42 = vpop.f32.mrb[71].mxu0 }
 0x4ac   : > { %v1850_v40 = vadd.f32 %v2744_v28, %v2253_v32  ;;  %v2256_v35 = vadd.f32 %v2255_v42, %v2254_v30  ;;  %v2757_v42 = vld [vmem:[%s2935_s23 + $0xb8] sm:$0xff] }
 0x4ae   : > { %1946 = vst [vmem:[%s3935_s21 + $0x50] sm:$0xff] %v1850_v40  ;;  %v1853_v43 = vadd.f32 %v2745_v10, %v2256_v35 }
 0x4b0   : > { %1947 = vst [vmem:[%s3935_s21 + $0x58] sm:$0xff] %v1853_v43  ;;  %v2257_v60 = vpop.f32.mrb[72].mxu0 }
 0x4b1   : > { %v2258_v22 = vpop.f32.mrb[73].mxu0 }
 0x4b2   : > { %v2259_v23 = vadd.f32 %v2258_v22, %v2257_v60  ;;  %v2260_v57 = vpop.f32.mrb[74].mxu0  ;;  %v2758_v22 = vld [vmem:[%s2935_s23 + $0xc0] sm:$0xff] }
 0x4b3   : > { %v2261_v50 = vpop.f32.mrb[75].mxu0 }
 0x4b4   : > { %v1858_v8 = vadd.f32 %v2746_v17, %v2259_v23  ;;  %v2262_v51 = vadd.f32 %v2261_v50, %v2260_v57  ;;  %v2759_v50 = vld [vmem:[%s2935_s23 + $0xc8] sm:$0xff] }
 0x4b6   : > { %1948 = vst [vmem:[%s3935_s21 + $0x60] sm:$0xff] %v1858_v8  ;;  %v1861_v16 = vadd.f32 %v2747_v26, %v2262_v51 }
 0x4b8   : > { %1949 = vst [vmem:[%s3935_s21 + $0x68] sm:$0xff] %v1861_v16  ;;  %v2263_v47 = vpop.f32.mrb[76].mxu0 }
 0x4b9   : > { %v2264_v48 = vpop.f32.mrb[77].mxu0 }
 0x4ba   : > { %v2265_v38 = vadd.f32 %v2264_v48, %v2263_v47  ;;  %v2266_v54 = vpop.f32.mrb[78].mxu0  ;;  %v2760_v48 = vld [vmem:[%s2935_s23 + $0xd0] sm:$0xff] }
 0x4bb   : > { %v2267_v3 = vpop.f32.mrb[79].mxu0 }
 0x4bc   : > { %v1866_v4 = vadd.f32 %v2748_v6, %v2265_v38  ;;  %v2268_v52 = vadd.f32 %v2267_v3, %v2266_v54  ;;  %v2761_v3 = vld [vmem:[%s2935_s23 + $0xd8] sm:$0xff] }
 0x4be   : > { %1950 = vst [vmem:[%s3935_s21 + $0x70] sm:$0xff] %v1866_v4  ;;  %v1869_v34 = vadd.f32 %v2749_v14, %v2268_v52 }
 0x4c0   : > { %1951 = vst [vmem:[%s3935_s21 + $0x78] sm:$0xff] %v1869_v34  ;;  %v2269_v59 = vpop.f32.mrb[80].mxu0 }
 0x4c1   : > { %v2270_v49 = vpop.f32.mrb[81].mxu0 }
 0x4c2   : > { %v2271_v20 = vadd.f32 %v2270_v49, %v2269_v59  ;;  %v2272_v61 = vpop.f32.mrb[82].mxu0  ;;  %v2762_v49 = vld [vmem:[%s2935_s23 + $0xe0] sm:$0xff] }
 0x4c3   : > { %v2273_v33 = vpop.f32.mrb[83].mxu0 }
 0x4c4   : > { %v1874_v37 = vadd.f32 %v2750_v7, %v2271_v20  ;;  %v2274_v12 = vadd.f32 %v2273_v33, %v2272_v61  ;;  %v2763_v33 = vld [vmem:[%s2935_s23 + $0xe8] sm:$0xff] }
 0x4c6   : > { %1952 = vst [vmem:[%s3935_s21 + $0x80] sm:$0xff] %v1874_v37  ;;  %v1877_v63 = vadd.f32 %v2751_v39, %v2274_v12 }
 0x4c8   : > { %1953 = vst [vmem:[%s3935_s21 + $0x88] sm:$0xff] %v1877_v63  ;;  %v2275_v15 = vpop.f32.mrb[84].mxu0 }
 0x4c9   : > { %v2276_v5 = vpop.f32.mrb[85].mxu0 }
 0x4ca   : > { %v2277_v19 = vadd.f32 %v2276_v5, %v2275_v15  ;;  %v2278_v44 = vpop.f32.mrb[86].mxu0  ;;  %v2764_v5 = vld [vmem:[%s2935_s23 + $0xf0] sm:$0xff] }
 0x4cb   : > { %v2279_v36 = vpop.f32.mrb[87].mxu0 }
 0x4cc   : > { %v1882_v55 = vadd.f32 %v2752_v45, %v2277_v19  ;;  %v2280_v11 = vadd.f32 %v2279_v36, %v2278_v44  ;;  %v2765_v36 = vld [vmem:[%s2935_s23 + $0xf8] sm:$0xff] }
 0x4ce   : > { %1954 = vst [vmem:[%s3935_s21 + $0x90] sm:$0xff] %v1882_v55  ;;  %v1885_v62 = vadd.f32 %v2753_v58, %v2280_v11 }
 0x4d0   : > { %1955 = vst [vmem:[%s3935_s21 + $0x98] sm:$0xff] %v1885_v62  ;;  %v2281_v1 = vpop.f32.mrb[88].mxu0 }
 0x4d1   : > { %v2282_v13 = vpop.f32.mrb[89].mxu0 }
 0x4d2   : > { %v2283_v9 = vadd.f32 %v2282_v13, %v2281_v1  ;;  %v2284_v46 = vpop.f32.mrb[90].mxu0 }
 0x4d3   : > { %v2285_v2 = vpop.f32.mrb[91].mxu0 }
 0x4d4   : > { %v1890_v29 = vadd.f32 %v2754_v18, %v2283_v9  ;;  %v2286_v0 = vadd.f32 %v2285_v2, %v2284_v46 }
 0x4d6   : > { %1956 = vst [vmem:[%s3935_s21 + $0xa0] sm:$0xff] %v1890_v29  ;;  %v1893_v56 = vadd.f32 %v2755_v41, %v2286_v0 }
 0x4d8   : > { %1957 = vst [vmem:[%s3935_s21 + $0xa8] sm:$0xff] %v1893_v56  ;;  %v2287_v24 = vpop.f32.mrb[92].mxu0 }
 0x4d9   : > { %v2288_v25 = vpop.f32.mrb[93].mxu0 }
 0x4da   : > { %v2289_v53 = vadd.f32 %v2288_v25, %v2287_v24  ;;  %v2290_v27 = vpop.f32.mrb[94].mxu0 }
 0x4db   : > { %v2291_v21 = vpop.f32.mrb[95].mxu0 }
 0x4dc   : > { %v1898_v32 = vadd.f32 %v2756_v31, %v2289_v53  ;;  %v2292_v30 = vadd.f32 %v2291_v21, %v2290_v27 }
 0x4de   : > { %1958 = vst [vmem:[%s3935_s21 + $0xb0] sm:$0xff] %v1898_v32  ;;  %v1901_v28 = vadd.f32 %v2757_v42, %v2292_v30 }
 0x4e0   : > { %1959 = vst [vmem:[%s3935_s21 + $0xb8] sm:$0xff] %v1901_v28 }
 0x521   : > { %v2293_v40 = vpop.f32.mrb[96].mxu0 }
 0x522   : > { %v2294_v35 = vpop.f32.mrb[97].mxu0 }
 0x523   : > { %v2295_v10 = vadd.f32 %v2294_v35, %v2293_v40  ;;  %v2296_v43 = vpop.f32.mrb[98].mxu0 }
 0x524   : > { %v2297_v60 = vpop.f32.mrb[99].mxu0 }
 0x525   : > { %v1906_v23 = vadd.f32 %v2758_v22, %v2295_v10  ;;  %v2298_v57 = vadd.f32 %v2297_v60, %v2296_v43 }
 0x527   : > { %1960 = vst [vmem:[%s3935_s21 + $0xc0] sm:$0xff] %v1906_v23  ;;  %v1909_v17 = vadd.f32 %v2759_v50, %v2298_v57 }
 0x529   : > { %1961 = vst [vmem:[%s3935_s21 + $0xc8] sm:$0xff] %v1909_v17 }
 0x52a   : > { %v2299_v8 = vpop.f32.mrb[100].mxu0 }
 0x52b   : > { %v2300_v51 = vpop.f32.mrb[101].mxu0 }
 0x52c   : > { %v2301_v26 = vadd.f32 %v2300_v51, %v2299_v8  ;;  %v2302_v16 = vpop.f32.mrb[102].mxu0 }
 0x52d   : > { %v2303_v47 = vpop.f32.mrb[103].mxu0 }
 0x52e   : > { %v1914_v38 = vadd.f32 %v2760_v48, %v2301_v26  ;;  %v2304_v54 = vadd.f32 %v2303_v47, %v2302_v16 }
 0x530   : > { %1962 = vst [vmem:[%s3935_s21 + $0xd0] sm:$0xff] %v1914_v38  ;;  %v1917_v6 = vadd.f32 %v2761_v3, %v2304_v54 }
 0x532   : > { %1963 = vst [vmem:[%s3935_s21 + $0xd8] sm:$0xff] %v1917_v6  ;;  %v2305_v4 = vpop.f32.mrb[104].mxu0 }
 0x533   : > { %v2306_v52 = vpop.f32.mrb[105].mxu0 }
 0x534   : > { %v2307_v14 = vadd.f32 %v2306_v52, %v2305_v4  ;;  %v2308_v34 = vpop.f32.mrb[106].mxu0 }
 0x535   : > { %v2309_v59 = vpop.f32.mrb[107].mxu0 }
 0x536   : > { %v1922_v20 = vadd.f32 %v2762_v49, %v2307_v14  ;;  %v2310_v61 = vadd.f32 %v2309_v59, %v2308_v34 }
 0x538   : > { %1964 = vst [vmem:[%s3935_s21 + $0xe0] sm:$0xff] %v1922_v20  ;;  %v1925_v7 = vadd.f32 %v2763_v33, %v2310_v61 }
 0x53a   : > { %1965 = vst [vmem:[%s3935_s21 + $0xe8] sm:$0xff] %v1925_v7  ;;  %v2311_v37 = vpop.f32.mrb[108].mxu0 }
 0x53b   : > { %v2312_v12 = vpop.f32.mrb[109].mxu0 }
 0x53c   : > { %v2313_v39 = vadd.f32 %v2312_v12, %v2311_v37  ;;  %v2314_v63 = vpop.f32.mrb[110].mxu0 }
 0x53d   : > { %v2315_v15 = vpop.f32.mrb[111].mxu0 }
 0x53e   : > { %v1930_v19 = vadd.f32 %v2764_v5, %v2313_v39  ;;  %v2316_v44 = vadd.f32 %v2315_v15, %v2314_v63 }
 0x540   : > { %1966 = vst [vmem:[%s3935_s21 + $0xf0] sm:$0xff] %v1930_v19  ;;  %v1933_v45 = vadd.f32 %v2765_v36, %v2316_v44 }
 0x542   : > { %1967 = vst [vmem:[%s3935_s21 + $0xf8] sm:$0xff] %v1933_v45 }
 0x543   : > { %2779 = shalt.err (!%p2776_p3)
}
 0x544   : > { %s2780_s23 = scalar_lea.hbm %s4002_s13, 4096  ;;  %s2784_s20 = scalar_lea.hbm %s4059_s7, 8192 }
 0x545   : > { %p2781_p4 = scmp.ne.s32.totalorder %s4002_s13, %s2780_s23  ;;  %p2785_p9 = scmp.lt.u32.totalorder %s4002_s13, %s4059_s7 }
 0x546   : > { %p2786_p10 = scmp.lt.u32.totalorder %s2784_s20, %s2780_s23  ;;  %p2788_p12 = scmp.lt.u32.totalorder %s2780_s23, %s4002_s13 }
 0x547   : > { %p2782_p7 = pnand %p2781_p4, %p2911_p5 }
 0x548   : > { %p2787_p11 = por %p2786_p10, %p2785_p9 }
 0x549   : > { %p2783_p8 = pneg %p2782_p7 }
 0x54a   : > { %p2789_p13 = por %p2788_p12, %p2787_p11 }
 0x54c   : > { %p2790_p0 = pnand %p2789_p13, %p2783_p8 }
 0x54e   : > { %2793 = shalt.err (!%p2790_p0)
}
 0x54f   : > { %s2831_s8 = smov 128   ;;  %s2832_s9 = smov 8  }
 0x550   : > { %2477 = dma.vmem_to_hbm [thread:$0]  (%p2911_p5), %s4004_s29, 4096, %s4002_s13, %s4011_s28, %s2831_s8, %s2831_s8, %s2832_s9  }
 0x551 PF: > { %p2483_p1 = scmp.ge.s32.totalorder %s2828_s27, 2  ;;  %s1997_s14 = sand.u32 1, %s2816_s24  }
 0x552   : > { %s1998_s15 = scalar_lea.sflag [#allocation3], %s1997_s14 }
 0x553   : > { %p2480_p2 = pnand %p2483_p1, %p2915_p6 }
 0x555   : > { %2811 = dma.done.wait (!%p2480_p2), %s1998_s15, 4096  }
 0x556   : > { %2813 = vsyncadd (!%p2480_p2), %s1998_s15, 4294963200  ;;  %p17_p3 = scmp.ge.s32.totalorder %s2898_s30, 4   ;;  %s4211_s24 = smov %s2820_s25 }
 0x557   : > { %s4212_s25 = smov %s2824_s26  ;;  %s4213_s26 = smov %s2909_s10 }
 0x558   : > { %s4214_s27 = smov %s2898_s30  ;;  %19 = sbr.rel (!%p17_p3) target bundleno = 3 (0x3), region = 83 }
 0x55f   :  { %2003 = vsyncpa [#allocation3], 1 }
 0x560   :  { %2005 = vsyncpa [#allocation3 + $0x1], 1 }

</bundles_post_ra>
